<compile_context>
chip_gen: v7x
topology: tpu7x:2x2x1
jax: 0.10.0
libtpu: 0.0.40
codegen_flags: <defaults>
</compile_context>

<pallas_src>
import jax
import jax.numpy as jnp
from jax.experimental import pallas as pl
from jax.experimental.pallas import tpu as pltpu


def _sigmoid_eup(v):
    # sigmoid(x) = 0.5*tanh(x/2) + 0.5: one EUP push, no full-precision divide.
    return 0.5 * jnp.tanh(0.5 * v) + 0.5


# -----------------------------------------------------------------------------
# Fused Pallas kernel: all layers, both directions, full sequence, one launch.
# Gate column layout (width 8H): [ i(2H) | f(2H) | o(2H) | g(2H) ],
# each 2H group ordered [fwd H | bwd H].  h/c carried as (Bp, 2H) = [fwd | bwd].
# -----------------------------------------------------------------------------
def make_bilstm_kernel(seq_len, batch_pad, hidden, num_layers, num_act):
    T, Bp, H = seq_len, batch_pad, hidden

    def kernel(*refs):
        # refs = x, fwd_mask, (wih, whh, b, h0, c0) * L, out, act*num_act, gx
        x_ref = refs[0]
        mask_ref = refs[1]
        base = 2 + 5 * num_layers
        out_ref = refs[base]
        act_refs = refs[base + 1: base + 1 + num_act]
        gx_ref = refs[base + 1 + num_act]

        # Hoisted once: column mask selecting the forward-direction gate columns.
        fwd_col = mask_ref[...] > 0.5                      # (Bp, 8H) bool

        for layer in range(num_layers):
            wih_ref, whh_ref, b_ref, h0_ref, c0_ref = \
                refs[2 + 5 * layer: 7 + 5 * layer]
            src = x_ref if layer == 0 else act_refs[(layer - 1) % num_act]
            dst = out_ref if layer == num_layers - 1 else act_refs[layer % num_act]

            # Whole-sequence input projection for BOTH directions: bf16 MXU
            # operands, f32 accumulate, bias folded in.
            gx_ref[...] = (
                jnp.dot(src[...].astype(jnp.bfloat16), wih_ref[...],
                        preferred_element_type=jnp.float32)
                + b_ref[...])

            whh = whh_ref[...]                 # (2H, 8H), loop-invariant
            h0 = h0_ref[...]                   # (Bp, 2H) = [h_f | h_b]
            c0 = c0_ref[...]

            def step(s, carry):
                h, c = carry
                rf = pl.ds(pl.multiple_of(s * Bp, Bp), Bp)             # time s
                rb = pl.ds(pl.multiple_of((T - 1 - s) * Bp, Bp), Bp)   # T-1-s

                # Fused recurrence matmul for both directions (block-diag whh).
                gr = jnp.dot(h, whh, preferred_element_type=jnp.float32)
                # fwd columns take the projection at time s, bwd at time T-1-s.
                g = gr + jnp.where(fwd_col, gx_ref[rf, :], gx_ref[rb, :])

                sg = _sigmoid_eup(g[:, :6 * H])        # [i | f | o], both dirs
                gg = jnp.tanh(g[:, 6 * H:])            # [g],        both dirs

                i_g = sg[:, 0:2 * H]
                f_g = sg[:, 2 * H:4 * H]
                o_g = sg[:, 4 * H:6 * H]

                c_new = f_g * c + i_g * gg             # (Bp, 2H), no concat
                h_new = o_g * jnp.tanh(c_new)          # (Bp, 2H) = [h_f | h_b]

                dst[rf, 0:H] = h_new[:, 0:H]           # fwd out @ time s
                dst[rb, H:2 * H] = h_new[:, H:2 * H]   # bwd out @ time T-1-s
                return (h_new, c_new)

            jax.lax.fori_loop(0, T, step, (h0, c0),
                              unroll=True if T <= 16 else 4)

    return kernel


# -----------------------------------------------------------------------------
# Wrapper
# -----------------------------------------------------------------------------
@jax.jit
def bilstm_forward(x, layer_params, w_lin_t, b_lin, h0, c0):
    """x: (B, T, D) batch-first (PyTorch batch_first=True) -> (B, O).

    layer_params: list over layers of (wih_comb (D_l, 8H) bf16,
                                       whh_comb (2H, 8H) f32 block-diag,
                                       b_comb   (1, 8H)  f32),
    all in the permuted gate-column layout [i|f|o|g] x [fwd|bwd].
    h0, c0: (2*num_layers, B, H), PyTorch layout (layer-major, fwd then bwd).
    """
    B, T, D0 = x.shape
    L = len(layer_params)
    H = layer_params[0][1].shape[0] // 2
    Bp = ((B + 7) // 8) * 8                      # sublane-aligned padded batch

    # time-major rows, batch padded with zero rows: row t*Bp + b  <->  (t, b)
    x_tbd = jnp.transpose(x, (1, 0, 2))
    if Bp != B:
        x_tbd = jnp.pad(x_tbd, ((0, 0), (0, Bp - B), (0, 0)))
    x2d = x_tbd.reshape(T * Bp, D0)

    # column mask: within each 2H gate group, first H columns = forward dir.
    cols = jnp.arange(8 * H, dtype=jnp.int32)
    fwd_mask = ((cols % (2 * H)) < H).astype(jnp.float32)
    fwd_mask = jnp.broadcast_to(fwd_mask[None, :], (Bp, 8 * H))

    flat_args = []
    for l, (wih_c, whh_c, b_c) in enumerate(layer_params):
        h0_l = jnp.concatenate([h0[2 * l], h0[2 * l + 1]], axis=1)   # (B, 2H)
        c0_l = jnp.concatenate([c0[2 * l], c0[2 * l + 1]], axis=1)
        if Bp != B:                      # zero-pad so padded rows stay benign
            h0_l = jnp.pad(h0_l, ((0, Bp - B), (0, 0)))
            c0_l = jnp.pad(c0_l, ((0, Bp - B), (0, 0)))
        flat_args += [wih_c, whh_c, b_c, h0_l, c0_l]

    num_act = min(2, max(L - 1, 0))      # no unused ping-pong scratch for L==2
    vmem = pl.BlockSpec(memory_space=pltpu.MemorySpace.VMEM)
    out = pl.pallas_call(
        make_bilstm_kernel(T, Bp, H, L, num_act),
        out_shape=jax.ShapeDtypeStruct((T * Bp, 2 * H), jnp.float32),
        in_specs=[vmem] * (2 + 5 * L),
        out_specs=vmem,
        scratch_shapes=([pltpu.VMEM((T * Bp, 2 * H), jnp.float32)] * num_act
                        + [pltpu.VMEM((T * Bp, 8 * H), jnp.float32)]),
        compiler_params=pltpu.CompilerParams(
            vmem_limit_bytes=32 * 1024 * 1024),
    )(x2d, fwd_mask, *flat_args)

    # Only the real batch rows of the last timestep (padded rows are dropped).
    last = out[(T - 1) * Bp:(T - 1) * Bp + B, :]
    feat = 0.5 * (last[:, :H] + last[:, H:])      # mean over the 2 directions
    return feat @ w_lin_t + b_lin                 # tiny head: plain XLA


# -----------------------------------------------------------------------------
# Pure-JAX reference (correctness check)
# -----------------------------------------------------------------------------
def _lstm_ref_dir(x_tbd, wih_t, whh_t, b, h0, c0):
    H = whh_t.shape[0]

    def step(carry, x_t):
        h, c = carry
        gates = x_t @ wih_t + h @ whh_t + b
        i_g = jax.nn.sigmoid(gates[:, 0:H])
        f_g = jax.nn.sigmoid(gates[:, H:2 * H])
        g_g = jnp.tanh(gates[:, 2 * H:3 * H])
        o_g = jax.nn.sigmoid(gates[:, 3 * H:4 * H])
        c = f_g * c + i_g * g_g
        h = o_g * jnp.tanh(c)
        return (h, c), h

    _, hs = jax.lax.scan(step, (h0, c0), x_tbd)
    return hs


def bilstm_ref(x, raw_layers, w_lin_t, b_lin, h0, c0):
    B, T, _ = x.shape
    H = raw_layers[0][0][1].shape[0]
    layer_in = jnp.transpose(x, (1, 0, 2))
    for l, (fwd, bwd) in enumerate(raw_layers):
        out_f = _lstm_ref_dir(layer_in, *fwd, h0[2 * l], c0[2 * l])
        out_b = _lstm_ref_dir(layer_in[::-1], *bwd,
                              h0[2 * l + 1], c0[2 * l + 1])[::-1]
        layer_in = jnp.concatenate([out_f, out_b], axis=-1)
    out = layer_in.reshape(T, B, 2, H).mean(axis=2)
    return out[-1] @ w_lin_t + b_lin


# -----------------------------------------------------------------------------
# Main
# -----------------------------------------------------------------------------
if __name__ == "__main__":
    input_size = 4
    hidden_size = 32
    num_layers = 2
    output_size = 3
    batch_size = 4
    seq_len = 8

    H = hidden_size
    key = jax.random.PRNGKey(0)
    bound = 1.0 / (hidden_size ** 0.5)

    def gate_blocks(wT):
        # columns of wT are in PyTorch gate order [i, f, g, o]
        return jnp.split(wT, 4, axis=1)

    raw_layers = []     # reference: per-direction transposed weights (f32)
    fused_layers = []   # kernel: fused, gate-column-permuted weights
    for layer in range(num_layers):
        d_in = input_size if layer == 0 else 2 * hidden_size
        dirs = []
        for direction in range(2):
            key, k1, k2, k3, k4 = jax.random.split(key, 5)
            w_ih = jax.random.uniform(k1, (4 * H, d_in), jnp.float32, -bound, bound)
            # Input-projection weights live in bf16 on the MXU; round-trip here
            # so the f32 reference uses the identical values.
            w_ih = w_ih.astype(jnp.bfloat16).astype(jnp.float32)
            w_hh = jax.random.uniform(k2, (4 * H, H), jnp.float32, -bound, bound)
            b_ih = jax.random.uniform(k3, (4 * H,), jnp.float32, -bound, bound)
            b_hh = jax.random.uniform(k4, (4 * H,), jnp.float32, -bound, bound)
            dirs.append((w_ih.T, w_hh.T, (b_ih + b_hh).reshape(1, 4 * H)))
        raw_layers.append(tuple(dirs))

        (wihT_f, whhT_f, b_f), (wihT_b, whhT_b, b_b) = dirs
        xi_f, xf_f, xg_f, xo_f = gate_blocks(wihT_f)
        xi_b, xf_b, xg_b, xo_b = gate_blocks(wihT_b)
        wih_comb = jnp.concatenate(
            [xi_f, xi_b, xf_f, xf_b, xo_f, xo_b, xg_f, xg_b],
            axis=1).astype(jnp.bfloat16)                           # (d_in, 8H)

        hi_f, hf_f, hg_f, ho_f = gate_blocks(whhT_f)
        hi_b, hf_b, hg_b, ho_b = gate_blocks(whhT_b)
        Z = jnp.zeros((H, H), jnp.float32)
        whh_top = jnp.concatenate([hi_f, Z, hf_f, Z, ho_f, Z, hg_f, Z], axis=1)
        whh_bot = jnp.concatenate([Z, hi_b, Z, hf_b, Z, ho_b, Z, hg_b], axis=1)
        whh_comb = jnp.concatenate([whh_top, whh_bot], axis=0)     # (2H, 8H)

        bi_f, bf_f, bg_f, bo_f = gate_blocks(b_f)
        bi_b, bf_b, bg_b, bo_b = gate_blocks(b_b)
        b_comb = jnp.concatenate(
            [bi_f, bi_b, bf_f, bf_b, bo_f, bo_b, bg_f, bg_b], axis=1)  # (1, 8H)

        fused_layers.append((wih_comb, whh_comb, b_comb))

    key, k1, k2 = jax.random.split(key, 3)
    w_lin = jax.random.uniform(k1, (output_size, H), jnp.float32, -bound, bound)
    b_lin = jax.random.uniform(k2, (output_size,), jnp.float32, -bound, bound)
    w_lin_t = w_lin.T
    b_lin_row = b_lin.reshape(1, output_size)

    # In the PyTorch module h_0/c_0 are fresh torch.randn every forward; here
    # they are deterministic inputs so the run is reproducible.
    key, k1, k2, k3 = jax.random.split(key, 4)
    h0 = jax.random.normal(k1, (2 * num_layers, batch_size, H), jnp.float32)
    c0 = jax.random.normal(k2, (2 * num_layers, batch_size, H), jnp.float32)
    x = jax.random.normal(k3, (batch_size, seq_len, input_size), jnp.float32)

    pred = bilstm_forward(x, fused_layers, w_lin_t, b_lin_row, h0, c0)
    pred = jax.block_until_ready(pred)

    ref = bilstm_ref(x, raw_layers, w_lin_t, b_lin_row, h0, c0)
    assert pred.shape == (batch_size, output_size), pred.shape
    # Tolerance accounts for the bf16 MXU operands of the input projection
    # (weights are round-tripped through bf16 for both paths, so the residual
    # difference is only the in-kernel bf16 activation rounding).
    assert jnp.allclose(pred, ref, rtol=1e-2, atol=1e-2), (pred, ref)

    print("KERNEL_OK")
</pallas_src>

<mosaic_0001>
module attributes {stable_mosaic.version = 11 : i64} {
  func.func @kernel(%arg0: memref<64x4xf32, #tpu.memory_space<vmem>>, %arg1: memref<8x256xf32, #tpu.memory_space<vmem>>, %arg2: memref<4x256xbf16, #tpu.memory_space<vmem>>, %arg3: memref<64x256xf32, #tpu.memory_space<vmem>>, %arg4: memref<1x256xf32, #tpu.memory_space<vmem>>, %arg5: memref<8x64xf32, #tpu.memory_space<vmem>>, %arg6: memref<8x64xf32, #tpu.memory_space<vmem>>, %arg7: memref<64x256xbf16, #tpu.memory_space<vmem>>, %arg8: memref<64x256xf32, #tpu.memory_space<vmem>>, %arg9: memref<1x256xf32, #tpu.memory_space<vmem>>, %arg10: memref<8x64xf32, #tpu.memory_space<vmem>>, %arg11: memref<8x64xf32, #tpu.memory_space<vmem>>, %arg12: memref<64x64xf32, #tpu.memory_space<vmem>>, %arg13: memref<64x64xf32, #tpu.memory_space<vmem>>, %arg14: memref<64x256xf32, #tpu.memory_space<vmem>>) attributes {dimension_semantics = [], scalar_prefetch = 0 : i64, scratch_operands = 2 : i64, tpu.core_type = #tpu.core_type<tc>} {
    %c0 = arith.constant 0 : index
    %c0_0 = arith.constant 0 : index
    %0 = vector.load %arg1[%c0, %c0_0] : memref<8x256xf32, #tpu.memory_space<vmem>>, vector<8x256xf32>
    %cst = arith.constant 5.000000e-01 : f32
    %1 = vector.broadcast %cst : f32 to vector<8x256xf32>
    %2 = arith.cmpf ogt, %0, %1 : vector<8x256xf32>
    %c0_1 = arith.constant 0 : index
    %c0_2 = arith.constant 0 : index
    %3 = vector.load %arg0[%c0_1, %c0_2] : memref<64x4xf32, #tpu.memory_space<vmem>>, vector<64x4xf32>
    %4 = arith.truncf %3 : vector<64x4xf32> to vector<64x4xbf16>
    %c0_3 = arith.constant 0 : index
    %c0_4 = arith.constant 0 : index
    %5 = vector.load %arg2[%c0_3, %c0_4] : memref<4x256xbf16, #tpu.memory_space<vmem>>, vector<4x256xbf16>
    %cst_5 = arith.constant dense<0.000000e+00> : vector<64x256xf32>
    %6 = tpu.matmul %4, %5, %cst_5 {dimension_numbers = #tpu.dot_dimension_numbers<[1], [0], [0], [1], [0, 0, 1, 1], [], []>} : vector<64x4xbf16>, vector<4x256xbf16>, vector<64x256xf32> -> vector<64x256xf32>
    %c0_6 = arith.constant 0 : index
    %c0_7 = arith.constant 0 : index
    %7 = vector.load %arg4[%c0_6, %c0_7] : memref<1x256xf32, #tpu.memory_space<vmem>>, vector<1x256xf32>
    %8 = vector.broadcast %7 : vector<1x256xf32> to vector<64x256xf32>
    %9 = arith.addf %6, %8 : vector<64x256xf32>
    %c0_8 = arith.constant 0 : index
    %c0_9 = arith.constant 0 : index
    %10 = vector.load %arg14[%c0_8, %c0_9] : memref<64x256xf32, #tpu.memory_space<vmem>>, vector<64x256xf32>
    tpu.vector_store %arg14[%c0_8, %c0_9], %9 {strides = array<i32>} : memref<64x256xf32, #tpu.memory_space<vmem>>, vector<64x256xf32>,
    %c0_10 = arith.constant 0 : index
    %c0_11 = arith.constant 0 : index
    %11 = vector.load %arg3[%c0_10, %c0_11] : memref<64x256xf32, #tpu.memory_space<vmem>>, vector<64x256xf32>
    %c0_12 = arith.constant 0 : index
    %c0_13 = arith.constant 0 : index
    %12 = vector.load %arg5[%c0_12, %c0_13] : memref<8x64xf32, #tpu.memory_space<vmem>>, vector<8x64xf32>
    %c0_14 = arith.constant 0 : index
    %c0_15 = arith.constant 0 : index
    %13 = vector.load %arg6[%c0_14, %c0_15] : memref<8x64xf32, #tpu.memory_space<vmem>>, vector<8x64xf32>
    %c0_i32 = arith.constant 0 : i32
    %c8_i32 = arith.constant 8 : i32
    %14 = arith.muli %c0_i32, %c8_i32 : i32
    %15 = tpu.assume_multiple %14, 8 : i32
    %c7_i32 = arith.constant 7 : i32
    %16 = arith.subi %c7_i32, %c0_i32 : i32
    %c8_i32_16 = arith.constant 8 : i32
    %17 = arith.muli %16, %c8_i32_16 : i32
    %18 = tpu.assume_multiple %17, 8 : i32
    %cst_17 = arith.constant dense<0.000000e+00> : vector<8x256xf32>
    %19 = tpu.matmul %12, %11, %cst_17 {dimension_numbers = #tpu.dot_dimension_numbers<[1], [0], [0], [1], [0, 0, 1, 1], [], []>} : vector<8x64xf32>, vector<64x256xf32>, vector<8x256xf32> -> vector<8x256xf32>
    %20 = arith.index_cast %15 : i32 to index
    %c0_18 = arith.constant 0 : index
    %21 = vector.load %arg14[%20, %c0_18] : memref<64x256xf32, #tpu.memory_space<vmem>>, vector<8x256xf32>
    %22 = arith.index_cast %18 : i32 to index
    %c0_19 = arith.constant 0 : index
    %23 = vector.load %arg14[%22, %c0_19] : memref<64x256xf32, #tpu.memory_space<vmem>>, vector<8x256xf32>
    %24 = arith.select %2, %21, %23 : vector<8x256xi1>, vector<8x256xf32>
    %25 = arith.addf %19, %24 : vector<8x256xf32>
    %26 = vector.extract_strided_slice %25 {offsets = [0, 0], sizes = [8, 192], strides = [1, 1]} : vector<8x256xf32> to vector<8x192xf32>
    %cst_20 = arith.constant 5.000000e-01 : f32
    %27 = vector.broadcast %cst_20 : f32 to vector<8x192xf32>
    %28 = arith.mulf %27, %26 : vector<8x192xf32>
    %29 = math.tanh %28 : vector<8x192xf32>
    %cst_21 = arith.constant 5.000000e-01 : f32
    %30 = vector.broadcast %cst_21 : f32 to vector<8x192xf32>
    %31 = arith.mulf %30, %29 : vector<8x192xf32>
    %cst_22 = arith.constant 5.000000e-01 : f32
    %32 = vector.broadcast %cst_22 : f32 to vector<8x192xf32>
    %33 = arith.addf %31, %32 : vector<8x192xf32>
    %34 = vector.extract_strided_slice %25 {offsets = [0, 192], sizes = [8, 64], strides = [1, 1]} : vector<8x256xf32> to vector<8x64xf32>
    %35 = math.tanh %34 : vector<8x64xf32>
    %36 = vector.extract_strided_slice %33 {offsets = [0, 0], sizes = [8, 64], strides = [1, 1]} : vector<8x192xf32> to vector<8x64xf32>
    %37 = vector.extract_strided_slice %33 {offsets = [0, 64], sizes = [8, 64], strides = [1, 1]} : vector<8x192xf32> to vector<8x64xf32>
    %38 = vector.extract_strided_slice %33 {offsets = [0, 128], sizes = [8, 64], strides = [1, 1]} : vector<8x192xf32> to vector<8x64xf32>
    %39 = arith.mulf %37, %13 : vector<8x64xf32>
    %40 = arith.mulf %36, %35 : vector<8x64xf32>
    %41 = arith.addf %39, %40 : vector<8x64xf32>
    %42 = math.tanh %41 : vector<8x64xf32>
    %43 = arith.mulf %38, %42 : vector<8x64xf32>
    %44 = vector.extract_strided_slice %43 {offsets = [0, 0], sizes = [8, 32], strides = [1, 1]} : vector<8x64xf32> to vector<8x32xf32>
    %45 = arith.index_cast %15 : i32 to index
    %c0_23 = arith.constant 0 : index
    %46 = vector.load %arg13[%45, %c0_23] : memref<64x64xf32, #tpu.memory_space<vmem>>, vector<8x32xf32>
    tpu.vector_store %arg13[%45, %c0_23], %44 {strides = array<i32>} : memref<64x64xf32, #tpu.memory_space<vmem>>, vector<8x32xf32>,
    %47 = vector.extract_strided_slice %43 {offsets = [0, 32], sizes = [8, 32], strides = [1, 1]} : vector<8x64xf32> to vector<8x32xf32>
    %48 = arith.index_cast %18 : i32 to index
    %c32 = arith.constant 32 : index
    %49 = vector.load %arg13[%48, %c32] : memref<64x64xf32, #tpu.memory_space<vmem>>, vector<8x32xf32>
    tpu.vector_store %arg13[%48, %c32], %47 {strides = array<i32>} : memref<64x64xf32, #tpu.memory_space<vmem>>, vector<8x32xf32>,
    %c1_i32 = arith.constant 1 : i32
    %c8_i32_24 = arith.constant 8 : i32
    %50 = arith.muli %c1_i32, %c8_i32_24 : i32
    %51 = tpu.assume_multiple %50, 8 : i32
    %c7_i32_25 = arith.constant 7 : i32
    %52 = arith.subi %c7_i32_25, %c1_i32 : i32
    %c8_i32_26 = arith.constant 8 : i32
    %53 = arith.muli %52, %c8_i32_26 : i32
    %54 = tpu.assume_multiple %53, 8 : i32
    %cst_27 = arith.constant dense<0.000000e+00> : vector<8x256xf32>
    %55 = tpu.matmul %43, %11, %cst_27 {dimension_numbers = #tpu.dot_dimension_numbers<[1], [0], [0], [1], [0, 0, 1, 1], [], []>} : vector<8x64xf32>, vector<64x256xf32>, vector<8x256xf32> -> vector<8x256xf32>
    %56 = arith.index_cast %51 : i32 to index
    %c0_28 = arith.constant 0 : index
    %57 = vector.load %arg14[%56, %c0_28] : memref<64x256xf32, #tpu.memory_space<vmem>>, vector<8x256xf32>
    %58 = arith.index_cast %54 : i32 to index
    %c0_29 = arith.constant 0 : index
    %59 = vector.load %arg14[%58, %c0_29] : memref<64x256xf32, #tpu.memory_space<vmem>>, vector<8x256xf32>
    %60 = arith.select %2, %57, %59 : vector<8x256xi1>, vector<8x256xf32>
    %61 = arith.addf %55, %60 : vector<8x256xf32>
    %62 = vector.extract_strided_slice %61 {offsets = [0, 0], sizes = [8, 192], strides = [1, 1]} : vector<8x256xf32> to vector<8x192xf32>
    %cst_30 = arith.constant 5.000000e-01 : f32
    %63 = vector.broadcast %cst_30 : f32 to vector<8x192xf32>
    %64 = arith.mulf %63, %62 : vector<8x192xf32>
    %65 = math.tanh %64 : vector<8x192xf32>
    %cst_31 = arith.constant 5.000000e-01 : f32
    %66 = vector.broadcast %cst_31 : f32 to vector<8x192xf32>
    %67 = arith.mulf %66, %65 : vector<8x192xf32>
    %cst_32 = arith.constant 5.000000e-01 : f32
    %68 = vector.broadcast %cst_32 : f32 to vector<8x192xf32>
    %69 = arith.addf %67, %68 : vector<8x192xf32>
    %70 = vector.extract_strided_slice %61 {offsets = [0, 192], sizes = [8, 64], strides = [1, 1]} : vector<8x256xf32> to vector<8x64xf32>
    %71 = math.tanh %70 : vector<8x64xf32>
    %72 = vector.extract_strided_slice %69 {offsets = [0, 0], sizes = [8, 64], strides = [1, 1]} : vector<8x192xf32> to vector<8x64xf32>
    %73 = vector.extract_strided_slice %69 {offsets = [0, 64], sizes = [8, 64], strides = [1, 1]} : vector<8x192xf32> to vector<8x64xf32>
    %74 = vector.extract_strided_slice %69 {offsets = [0, 128], sizes = [8, 64], strides = [1, 1]} : vector<8x192xf32> to vector<8x64xf32>
    %75 = arith.mulf %73, %41 : vector<8x64xf32>
    %76 = arith.mulf %72, %71 : vector<8x64xf32>
    %77 = arith.addf %75, %76 : vector<8x64xf32>
    %78 = math.tanh %77 : vector<8x64xf32>
    %79 = arith.mulf %74, %78 : vector<8x64xf32>
    %80 = vector.extract_strided_slice %79 {offsets = [0, 0], sizes = [8, 32], strides = [1, 1]} : vector<8x64xf32> to vector<8x32xf32>
    %81 = arith.index_cast %51 : i32 to index
    %c0_33 = arith.constant 0 : index
    %82 = vector.load %arg13[%81, %c0_33] : memref<64x64xf32, #tpu.memory_space<vmem>>, vector<8x32xf32>
    tpu.vector_store %arg13[%81, %c0_33], %80 {strides = array<i32>} : memref<64x64xf32, #tpu.memory_space<vmem>>, vector<8x32xf32>,
    %83 = vector.extract_strided_slice %79 {offsets = [0, 32], sizes = [8, 32], strides = [1, 1]} : vector<8x64xf32> to vector<8x32xf32>
    %84 = arith.index_cast %54 : i32 to index
    %c32_34 = arith.constant 32 : index
    %85 = vector.load %arg13[%84, %c32_34] : memref<64x64xf32, #tpu.memory_space<vmem>>, vector<8x32xf32>
    tpu.vector_store %arg13[%84, %c32_34], %83 {strides = array<i32>} : memref<64x64xf32, #tpu.memory_space<vmem>>, vector<8x32xf32>,
    %c2_i32 = arith.constant 2 : i32
    %c8_i32_35 = arith.constant 8 : i32
    %86 = arith.muli %c2_i32, %c8_i32_35 : i32
    %87 = tpu.assume_multiple %86, 8 : i32
    %c7_i32_36 = arith.constant 7 : i32
    %88 = arith.subi %c7_i32_36, %c2_i32 : i32
    %c8_i32_37 = arith.constant 8 : i32
    %89 = arith.muli %88, %c8_i32_37 : i32
    %90 = tpu.assume_multiple %89, 8 : i32
    %cst_38 = arith.constant dense<0.000000e+00> : vector<8x256xf32>
    %91 = tpu.matmul %79, %11, %cst_38 {dimension_numbers = #tpu.dot_dimension_numbers<[1], [0], [0], [1], [0, 0, 1, 1], [], []>} : vector<8x64xf32>, vector<64x256xf32>, vector<8x256xf32> -> vector<8x256xf32>
    %92 = arith.index_cast %87 : i32 to index
    %c0_39 = arith.constant 0 : index
    %93 = vector.load %arg14[%92, %c0_39] : memref<64x256xf32, #tpu.memory_space<vmem>>, vector<8x256xf32>
    %94 = arith.index_cast %90 : i32 to index
    %c0_40 = arith.constant 0 : index
    %95 = vector.load %arg14[%94, %c0_40] : memref<64x256xf32, #tpu.memory_space<vmem>>, vector<8x256xf32>
    %96 = arith.select %2, %93, %95 : vector<8x256xi1>, vector<8x256xf32>
    %97 = arith.addf %91, %96 : vector<8x256xf32>
    %98 = vector.extract_strided_slice %97 {offsets = [0, 0], sizes = [8, 192], strides = [1, 1]} : vector<8x256xf32> to vector<8x192xf32>
    %cst_41 = arith.constant 5.000000e-01 : f32
    %99 = vector.broadcast %cst_41 : f32 to vector<8x192xf32>
    %100 = arith.mulf %99, %98 : vector<8x192xf32>
    %101 = math.tanh %100 : vector<8x192xf32>
    %cst_42 = arith.constant 5.000000e-01 : f32
    %102 = vector.broadcast %cst_42 : f32 to vector<8x192xf32>
    %103 = arith.mulf %102, %101 : vector<8x192xf32>
    %cst_43 = arith.constant 5.000000e-01 : f32
    %104 = vector.broadcast %cst_43 : f32 to vector<8x192xf32>
    %105 = arith.addf %103, %104 : vector<8x192xf32>
    %106 = vector.extract_strided_slice %97 {offsets = [0, 192], sizes = [8, 64], strides = [1, 1]} : vector<8x256xf32> to vector<8x64xf32>
    %107 = math.tanh %106 : vector<8x64xf32>
    %108 = vector.extract_strided_slice %105 {offsets = [0, 0], sizes = [8, 64], strides = [1, 1]} : vector<8x192xf32> to vector<8x64xf32>
    %109 = vector.extract_strided_slice %105 {offsets = [0, 64], sizes = [8, 64], strides = [1, 1]} : vector<8x192xf32> to vector<8x64xf32>
    %110 = vector.extract_strided_slice %105 {offsets = [0, 128], sizes = [8, 64], strides = [1, 1]} : vector<8x192xf32> to vector<8x64xf32>
    %111 = arith.mulf %109, %77 : vector<8x64xf32>
    %112 = arith.mulf %108, %107 : vector<8x64xf32>
    %113 = arith.addf %111, %112 : vector<8x64xf32>
    %114 = math.tanh %113 : vector<8x64xf32>
    %115 = arith.mulf %110, %114 : vector<8x64xf32>
    %116 = vector.extract_strided_slice %115 {offsets = [0, 0], sizes = [8, 32], strides = [1, 1]} : vector<8x64xf32> to vector<8x32xf32>
    %117 = arith.index_cast %87 : i32 to index
    %c0_44 = arith.constant 0 : index
    %118 = vector.load %arg13[%117, %c0_44] : memref<64x64xf32, #tpu.memory_space<vmem>>, vector<8x32xf32>
    tpu.vector_store %arg13[%117, %c0_44], %116 {strides = array<i32>} : memref<64x64xf32, #tpu.memory_space<vmem>>, vector<8x32xf32>,
    %119 = vector.extract_strided_slice %115 {offsets = [0, 32], sizes = [8, 32], strides = [1, 1]} : vector<8x64xf32> to vector<8x32xf32>
    %120 = arith.index_cast %90 : i32 to index
    %c32_45 = arith.constant 32 : index
    %121 = vector.load %arg13[%120, %c32_45] : memref<64x64xf32, #tpu.memory_space<vmem>>, vector<8x32xf32>
    tpu.vector_store %arg13[%120, %c32_45], %119 {strides = array<i32>} : memref<64x64xf32, #tpu.memory_space<vmem>>, vector<8x32xf32>,
    %c3_i32 = arith.constant 3 : i32
    %c8_i32_46 = arith.constant 8 : i32
    %122 = arith.muli %c3_i32, %c8_i32_46 : i32
    %123 = tpu.assume_multiple %122, 8 : i32
    %c7_i32_47 = arith.constant 7 : i32
    %124 = arith.subi %c7_i32_47, %c3_i32 : i32
    %c8_i32_48 = arith.constant 8 : i32
    %125 = arith.muli %124, %c8_i32_48 : i32
    %126 = tpu.assume_multiple %125, 8 : i32
    %cst_49 = arith.constant dense<0.000000e+00> : vector<8x256xf32>
    %127 = tpu.matmul %115, %11, %cst_49 {dimension_numbers = #tpu.dot_dimension_numbers<[1], [0], [0], [1], [0, 0, 1, 1], [], []>} : vector<8x64xf32>, vector<64x256xf32>, vector<8x256xf32> -> vector<8x256xf32>
    %128 = arith.index_cast %123 : i32 to index
    %c0_50 = arith.constant 0 : index
    %129 = vector.load %arg14[%128, %c0_50] : memref<64x256xf32, #tpu.memory_space<vmem>>, vector<8x256xf32>
    %130 = arith.index_cast %126 : i32 to index
    %c0_51 = arith.constant 0 : index
    %131 = vector.load %arg14[%130, %c0_51] : memref<64x256xf32, #tpu.memory_space<vmem>>, vector<8x256xf32>
    %132 = arith.select %2, %129, %131 : vector<8x256xi1>, vector<8x256xf32>
    %133 = arith.addf %127, %132 : vector<8x256xf32>
    %134 = vector.extract_strided_slice %133 {offsets = [0, 0], sizes = [8, 192], strides = [1, 1]} : vector<8x256xf32> to vector<8x192xf32>
    %cst_52 = arith.constant 5.000000e-01 : f32
    %135 = vector.broadcast %cst_52 : f32 to vector<8x192xf32>
    %136 = arith.mulf %135, %134 : vector<8x192xf32>
    %137 = math.tanh %136 : vector<8x192xf32>
    %cst_53 = arith.constant 5.000000e-01 : f32
    %138 = vector.broadcast %cst_53 : f32 to vector<8x192xf32>
    %139 = arith.mulf %138, %137 : vector<8x192xf32>
    %cst_54 = arith.constant 5.000000e-01 : f32
    %140 = vector.broadcast %cst_54 : f32 to vector<8x192xf32>
    %141 = arith.addf %139, %140 : vector<8x192xf32>
    %142 = vector.extract_strided_slice %133 {offsets = [0, 192], sizes = [8, 64], strides = [1, 1]} : vector<8x256xf32> to vector<8x64xf32>
    %143 = math.tanh %142 : vector<8x64xf32>
    %144 = vector.extract_strided_slice %141 {offsets = [0, 0], sizes = [8, 64], strides = [1, 1]} : vector<8x192xf32> to vector<8x64xf32>
    %145 = vector.extract_strided_slice %141 {offsets = [0, 64], sizes = [8, 64], strides = [1, 1]} : vector<8x192xf32> to vector<8x64xf32>
    %146 = vector.extract_strided_slice %141 {offsets = [0, 128], sizes = [8, 64], strides = [1, 1]} : vector<8x192xf32> to vector<8x64xf32>
    %147 = arith.mulf %145, %113 : vector<8x64xf32>
    %148 = arith.mulf %144, %143 : vector<8x64xf32>
    %149 = arith.addf %147, %148 : vector<8x64xf32>
    %150 = math.tanh %149 : vector<8x64xf32>
    %151 = arith.mulf %146, %150 : vector<8x64xf32>
    %152 = vector.extract_strided_slice %151 {offsets = [0, 0], sizes = [8, 32], strides = [1, 1]} : vector<8x64xf32> to vector<8x32xf32>
    %153 = arith.index_cast %123 : i32 to index
    %c0_55 = arith.constant 0 : index
    %154 = vector.load %arg13[%153, %c0_55] : memref<64x64xf32, #tpu.memory_space<vmem>>, vector<8x32xf32>
    tpu.vector_store %arg13[%153, %c0_55], %152 {strides = array<i32>} : memref<64x64xf32, #tpu.memory_space<vmem>>, vector<8x32xf32>,
    %155 = vector.extract_strided_slice %151 {offsets = [0, 32], sizes = [8, 32], strides = [1, 1]} : vector<8x64xf32> to vector<8x32xf32>
    %156 = arith.index_cast %126 : i32 to index
    %c32_56 = arith.constant 32 : index
    %157 = vector.load %arg13[%156, %c32_56] : memref<64x64xf32, #tpu.memory_space<vmem>>, vector<8x32xf32>
    tpu.vector_store %arg13[%156, %c32_56], %155 {strides = array<i32>} : memref<64x64xf32, #tpu.memory_space<vmem>>, vector<8x32xf32>,
    %c4_i32 = arith.constant 4 : i32
    %c8_i32_57 = arith.constant 8 : i32
    %158 = arith.muli %c4_i32, %c8_i32_57 : i32
    %159 = tpu.assume_multiple %158, 8 : i32
    %c7_i32_58 = arith.constant 7 : i32
    %160 = arith.subi %c7_i32_58, %c4_i32 : i32
    %c8_i32_59 = arith.constant 8 : i32
    %161 = arith.muli %160, %c8_i32_59 : i32
    %162 = tpu.assume_multiple %161, 8 : i32
    %cst_60 = arith.constant dense<0.000000e+00> : vector<8x256xf32>
    %163 = tpu.matmul %151, %11, %cst_60 {dimension_numbers = #tpu.dot_dimension_numbers<[1], [0], [0], [1], [0, 0, 1, 1], [], []>} : vector<8x64xf32>, vector<64x256xf32>, vector<8x256xf32> -> vector<8x256xf32>
    %164 = arith.index_cast %159 : i32 to index
    %c0_61 = arith.constant 0 : index
    %165 = vector.load %arg14[%164, %c0_61] : memref<64x256xf32, #tpu.memory_space<vmem>>, vector<8x256xf32>
    %166 = arith.index_cast %162 : i32 to index
    %c0_62 = arith.constant 0 : index
    %167 = vector.load %arg14[%166, %c0_62] : memref<64x256xf32, #tpu.memory_space<vmem>>, vector<8x256xf32>
    %168 = arith.select %2, %165, %167 : vector<8x256xi1>, vector<8x256xf32>
    %169 = arith.addf %163, %168 : vector<8x256xf32>
    %170 = vector.extract_strided_slice %169 {offsets = [0, 0], sizes = [8, 192], strides = [1, 1]} : vector<8x256xf32> to vector<8x192xf32>
    %cst_63 = arith.constant 5.000000e-01 : f32
    %171 = vector.broadcast %cst_63 : f32 to vector<8x192xf32>
    %172 = arith.mulf %171, %170 : vector<8x192xf32>
    %173 = math.tanh %172 : vector<8x192xf32>
    %cst_64 = arith.constant 5.000000e-01 : f32
    %174 = vector.broadcast %cst_64 : f32 to vector<8x192xf32>
    %175 = arith.mulf %174, %173 : vector<8x192xf32>
    %cst_65 = arith.constant 5.000000e-01 : f32
    %176 = vector.broadcast %cst_65 : f32 to vector<8x192xf32>
    %177 = arith.addf %175, %176 : vector<8x192xf32>
    %178 = vector.extract_strided_slice %169 {offsets = [0, 192], sizes = [8, 64], strides = [1, 1]} : vector<8x256xf32> to vector<8x64xf32>
    %179 = math.tanh %178 : vector<8x64xf32>
    %180 = vector.extract_strided_slice %177 {offsets = [0, 0], sizes = [8, 64], strides = [1, 1]} : vector<8x192xf32> to vector<8x64xf32>
    %181 = vector.extract_strided_slice %177 {offsets = [0, 64], sizes = [8, 64], strides = [1, 1]} : vector<8x192xf32> to vector<8x64xf32>
    %182 = vector.extract_strided_slice %177 {offsets = [0, 128], sizes = [8, 64], strides = [1, 1]} : vector<8x192xf32> to vector<8x64xf32>
    %183 = arith.mulf %181, %149 : vector<8x64xf32>
    %184 = arith.mulf %180, %179 : vector<8x64xf32>
    %185 = arith.addf %183, %184 : vector<8x64xf32>
    %186 = math.tanh %185 : vector<8x64xf32>
    %187 = arith.mulf %182, %186 : vector<8x64xf32>
    %188 = vector.extract_strided_slice %187 {offsets = [0, 0], sizes = [8, 32], strides = [1, 1]} : vector<8x64xf32> to vector<8x32xf32>
    %189 = arith.index_cast %159 : i32 to index
    %c0_66 = arith.constant 0 : index
    %190 = vector.load %arg13[%189, %c0_66] : memref<64x64xf32, #tpu.memory_space<vmem>>, vector<8x32xf32>
    tpu.vector_store %arg13[%189, %c0_66], %188 {strides = array<i32>} : memref<64x64xf32, #tpu.memory_space<vmem>>, vector<8x32xf32>,
    %191 = vector.extract_strided_slice %187 {offsets = [0, 32], sizes = [8, 32], strides = [1, 1]} : vector<8x64xf32> to vector<8x32xf32>
    %192 = arith.index_cast %162 : i32 to index
    %c32_67 = arith.constant 32 : index
    %193 = vector.load %arg13[%192, %c32_67] : memref<64x64xf32, #tpu.memory_space<vmem>>, vector<8x32xf32>
    tpu.vector_store %arg13[%192, %c32_67], %191 {strides = array<i32>} : memref<64x64xf32, #tpu.memory_space<vmem>>, vector<8x32xf32>,
    %c5_i32 = arith.constant 5 : i32
    %c8_i32_68 = arith.constant 8 : i32
    %194 = arith.muli %c5_i32, %c8_i32_68 : i32
    %195 = tpu.assume_multiple %194, 8 : i32
    %c7_i32_69 = arith.constant 7 : i32
    %196 = arith.subi %c7_i32_69, %c5_i32 : i32
    %c8_i32_70 = arith.constant 8 : i32
    %197 = arith.muli %196, %c8_i32_70 : i32
    %198 = tpu.assume_multiple %197, 8 : i32
    %cst_71 = arith.constant dense<0.000000e+00> : vector<8x256xf32>
    %199 = tpu.matmul %187, %11, %cst_71 {dimension_numbers = #tpu.dot_dimension_numbers<[1], [0], [0], [1], [0, 0, 1, 1], [], []>} : vector<8x64xf32>, vector<64x256xf32>, vector<8x256xf32> -> vector<8x256xf32>
    %200 = arith.index_cast %195 : i32 to index
    %c0_72 = arith.constant 0 : index
    %201 = vector.load %arg14[%200, %c0_72] : memref<64x256xf32, #tpu.memory_space<vmem>>, vector<8x256xf32>
    %202 = arith.index_cast %198 : i32 to index
    %c0_73 = arith.constant 0 : index
    %203 = vector.load %arg14[%202, %c0_73] : memref<64x256xf32, #tpu.memory_space<vmem>>, vector<8x256xf32>
    %204 = arith.select %2, %201, %203 : vector<8x256xi1>, vector<8x256xf32>
    %205 = arith.addf %199, %204 : vector<8x256xf32>
    %206 = vector.extract_strided_slice %205 {offsets = [0, 0], sizes = [8, 192], strides = [1, 1]} : vector<8x256xf32> to vector<8x192xf32>
    %cst_74 = arith.constant 5.000000e-01 : f32
    %207 = vector.broadcast %cst_74 : f32 to vector<8x192xf32>
    %208 = arith.mulf %207, %206 : vector<8x192xf32>
    %209 = math.tanh %208 : vector<8x192xf32>
    %cst_75 = arith.constant 5.000000e-01 : f32
    %210 = vector.broadcast %cst_75 : f32 to vector<8x192xf32>
    %211 = arith.mulf %210, %209 : vector<8x192xf32>
    %cst_76 = arith.constant 5.000000e-01 : f32
    %212 = vector.broadcast %cst_76 : f32 to vector<8x192xf32>
    %213 = arith.addf %211, %212 : vector<8x192xf32>
    %214 = vector.extract_strided_slice %205 {offsets = [0, 192], sizes = [8, 64], strides = [1, 1]} : vector<8x256xf32> to vector<8x64xf32>
    %215 = math.tanh %214 : vector<8x64xf32>
    %216 = vector.extract_strided_slice %213 {offsets = [0, 0], sizes = [8, 64], strides = [1, 1]} : vector<8x192xf32> to vector<8x64xf32>
    %217 = vector.extract_strided_slice %213 {offsets = [0, 64], sizes = [8, 64], strides = [1, 1]} : vector<8x192xf32> to vector<8x64xf32>
    %218 = vector.extract_strided_slice %213 {offsets = [0, 128], sizes = [8, 64], strides = [1, 1]} : vector<8x192xf32> to vector<8x64xf32>
    %219 = arith.mulf %217, %185 : vector<8x64xf32>
    %220 = arith.mulf %216, %215 : vector<8x64xf32>
    %221 = arith.addf %219, %220 : vector<8x64xf32>
    %222 = math.tanh %221 : vector<8x64xf32>
    %223 = arith.mulf %218, %222 : vector<8x64xf32>
    %224 = vector.extract_strided_slice %223 {offsets = [0, 0], sizes = [8, 32], strides = [1, 1]} : vector<8x64xf32> to vector<8x32xf32>
    %225 = arith.index_cast %195 : i32 to index
    %c0_77 = arith.constant 0 : index
    %226 = vector.load %arg13[%225, %c0_77] : memref<64x64xf32, #tpu.memory_space<vmem>>, vector<8x32xf32>
    tpu.vector_store %arg13[%225, %c0_77], %224 {strides = array<i32>} : memref<64x64xf32, #tpu.memory_space<vmem>>, vector<8x32xf32>,
    %227 = vector.extract_strided_slice %223 {offsets = [0, 32], sizes = [8, 32], strides = [1, 1]} : vector<8x64xf32> to vector<8x32xf32>
    %228 = arith.index_cast %198 : i32 to index
    %c32_78 = arith.constant 32 : index
    %229 = vector.load %arg13[%228, %c32_78] : memref<64x64xf32, #tpu.memory_space<vmem>>, vector<8x32xf32>
    tpu.vector_store %arg13[%228, %c32_78], %227 {strides = array<i32>} : memref<64x64xf32, #tpu.memory_space<vmem>>, vector<8x32xf32>,
    %c6_i32 = arith.constant 6 : i32
    %c8_i32_79 = arith.constant 8 : i32
    %230 = arith.muli %c6_i32, %c8_i32_79 : i32
    %231 = tpu.assume_multiple %230, 8 : i32
    %c7_i32_80 = arith.constant 7 : i32
    %232 = arith.subi %c7_i32_80, %c6_i32 : i32
    %c8_i32_81 = arith.constant 8 : i32
    %233 = arith.muli %232, %c8_i32_81 : i32
    %234 = tpu.assume_multiple %233, 8 : i32
    %cst_82 = arith.constant dense<0.000000e+00> : vector<8x256xf32>
    %235 = tpu.matmul %223, %11, %cst_82 {dimension_numbers = #tpu.dot_dimension_numbers<[1], [0], [0], [1], [0, 0, 1, 1], [], []>} : vector<8x64xf32>, vector<64x256xf32>, vector<8x256xf32> -> vector<8x256xf32>
    %236 = arith.index_cast %231 : i32 to index
    %c0_83 = arith.constant 0 : index
    %237 = vector.load %arg14[%236, %c0_83] : memref<64x256xf32, #tpu.memory_space<vmem>>, vector<8x256xf32>
    %238 = arith.index_cast %234 : i32 to index
    %c0_84 = arith.constant 0 : index
    %239 = vector.load %arg14[%238, %c0_84] : memref<64x256xf32, #tpu.memory_space<vmem>>, vector<8x256xf32>
    %240 = arith.select %2, %237, %239 : vector<8x256xi1>, vector<8x256xf32>
    %241 = arith.addf %235, %240 : vector<8x256xf32>
    %242 = vector.extract_strided_slice %241 {offsets = [0, 0], sizes = [8, 192], strides = [1, 1]} : vector<8x256xf32> to vector<8x192xf32>
    %cst_85 = arith.constant 5.000000e-01 : f32
    %243 = vector.broadcast %cst_85 : f32 to vector<8x192xf32>
    %244 = arith.mulf %243, %242 : vector<8x192xf32>
    %245 = math.tanh %244 : vector<8x192xf32>
    %cst_86 = arith.constant 5.000000e-01 : f32
    %246 = vector.broadcast %cst_86 : f32 to vector<8x192xf32>
    %247 = arith.mulf %246, %245 : vector<8x192xf32>
    %cst_87 = arith.constant 5.000000e-01 : f32
    %248 = vector.broadcast %cst_87 : f32 to vector<8x192xf32>
    %249 = arith.addf %247, %248 : vector<8x192xf32>
    %250 = vector.extract_strided_slice %241 {offsets = [0, 192], sizes = [8, 64], strides = [1, 1]} : vector<8x256xf32> to vector<8x64xf32>
    %251 = math.tanh %250 : vector<8x64xf32>
    %252 = vector.extract_strided_slice %249 {offsets = [0, 0], sizes = [8, 64], strides = [1, 1]} : vector<8x192xf32> to vector<8x64xf32>
    %253 = vector.extract_strided_slice %249 {offsets = [0, 64], sizes = [8, 64], strides = [1, 1]} : vector<8x192xf32> to vector<8x64xf32>
    %254 = vector.extract_strided_slice %249 {offsets = [0, 128], sizes = [8, 64], strides = [1, 1]} : vector<8x192xf32> to vector<8x64xf32>
    %255 = arith.mulf %253, %221 : vector<8x64xf32>
    %256 = arith.mulf %252, %251 : vector<8x64xf32>
    %257 = arith.addf %255, %256 : vector<8x64xf32>
    %258 = math.tanh %257 : vector<8x64xf32>
    %259 = arith.mulf %254, %258 : vector<8x64xf32>
    %260 = vector.extract_strided_slice %259 {offsets = [0, 0], sizes = [8, 32], strides = [1, 1]} : vector<8x64xf32> to vector<8x32xf32>
    %261 = arith.index_cast %231 : i32 to index
    %c0_88 = arith.constant 0 : index
    %262 = vector.load %arg13[%261, %c0_88] : memref<64x64xf32, #tpu.memory_space<vmem>>, vector<8x32xf32>
    tpu.vector_store %arg13[%261, %c0_88], %260 {strides = array<i32>} : memref<64x64xf32, #tpu.memory_space<vmem>>, vector<8x32xf32>,
    %263 = vector.extract_strided_slice %259 {offsets = [0, 32], sizes = [8, 32], strides = [1, 1]} : vector<8x64xf32> to vector<8x32xf32>
    %264 = arith.index_cast %234 : i32 to index
    %c32_89 = arith.constant 32 : index
    %265 = vector.load %arg13[%264, %c32_89] : memref<64x64xf32, #tpu.memory_space<vmem>>, vector<8x32xf32>
    tpu.vector_store %arg13[%264, %c32_89], %263 {strides = array<i32>} : memref<64x64xf32, #tpu.memory_space<vmem>>, vector<8x32xf32>,
    %c7_i32_90 = arith.constant 7 : i32
    %c8_i32_91 = arith.constant 8 : i32
    %266 = arith.muli %c7_i32_90, %c8_i32_91 : i32
    %267 = tpu.assume_multiple %266, 8 : i32
    %c7_i32_92 = arith.constant 7 : i32
    %268 = arith.subi %c7_i32_92, %c7_i32_90 : i32
    %c8_i32_93 = arith.constant 8 : i32
    %269 = arith.muli %268, %c8_i32_93 : i32
    %270 = tpu.assume_multiple %269, 8 : i32
    %cst_94 = arith.constant dense<0.000000e+00> : vector<8x256xf32>
    %271 = tpu.matmul %259, %11, %cst_94 {dimension_numbers = #tpu.dot_dimension_numbers<[1], [0], [0], [1], [0, 0, 1, 1], [], []>} : vector<8x64xf32>, vector<64x256xf32>, vector<8x256xf32> -> vector<8x256xf32>
    %272 = arith.index_cast %267 : i32 to index
    %c0_95 = arith.constant 0 : index
    %273 = vector.load %arg14[%272, %c0_95] : memref<64x256xf32, #tpu.memory_space<vmem>>, vector<8x256xf32>
    %274 = arith.index_cast %270 : i32 to index
    %c0_96 = arith.constant 0 : index
    %275 = vector.load %arg14[%274, %c0_96] : memref<64x256xf32, #tpu.memory_space<vmem>>, vector<8x256xf32>
    %276 = arith.select %2, %273, %275 : vector<8x256xi1>, vector<8x256xf32>
    %277 = arith.addf %271, %276 : vector<8x256xf32>
    %278 = vector.extract_strided_slice %277 {offsets = [0, 0], sizes = [8, 192], strides = [1, 1]} : vector<8x256xf32> to vector<8x192xf32>
    %cst_97 = arith.constant 5.000000e-01 : f32
    %279 = vector.broadcast %cst_97 : f32 to vector<8x192xf32>
    %280 = arith.mulf %279, %278 : vector<8x192xf32>
    %281 = math.tanh %280 : vector<8x192xf32>
    %cst_98 = arith.constant 5.000000e-01 : f32
    %282 = vector.broadcast %cst_98 : f32 to vector<8x192xf32>
    %283 = arith.mulf %282, %281 : vector<8x192xf32>
    %cst_99 = arith.constant 5.000000e-01 : f32
    %284 = vector.broadcast %cst_99 : f32 to vector<8x192xf32>
    %285 = arith.addf %283, %284 : vector<8x192xf32>
    %286 = vector.extract_strided_slice %277 {offsets = [0, 192], sizes = [8, 64], strides = [1, 1]} : vector<8x256xf32> to vector<8x64xf32>
    %287 = math.tanh %286 : vector<8x64xf32>
    %288 = vector.extract_strided_slice %285 {offsets = [0, 0], sizes = [8, 64], strides = [1, 1]} : vector<8x192xf32> to vector<8x64xf32>
    %289 = vector.extract_strided_slice %285 {offsets = [0, 64], sizes = [8, 64], strides = [1, 1]} : vector<8x192xf32> to vector<8x64xf32>
    %290 = vector.extract_strided_slice %285 {offsets = [0, 128], sizes = [8, 64], strides = [1, 1]} : vector<8x192xf32> to vector<8x64xf32>
    %291 = arith.mulf %289, %257 : vector<8x64xf32>
    %292 = arith.mulf %288, %287 : vector<8x64xf32>
    %293 = arith.addf %291, %292 : vector<8x64xf32>
    %294 = math.tanh %293 : vector<8x64xf32>
    %295 = arith.mulf %290, %294 : vector<8x64xf32>
    %296 = vector.extract_strided_slice %295 {offsets = [0, 0], sizes = [8, 32], strides = [1, 1]} : vector<8x64xf32> to vector<8x32xf32>
    %297 = arith.index_cast %267 : i32 to index
    %c0_100 = arith.constant 0 : index
    %298 = vector.load %arg13[%297, %c0_100] : memref<64x64xf32, #tpu.memory_space<vmem>>, vector<8x32xf32>
    tpu.vector_store %arg13[%297, %c0_100], %296 {strides = array<i32>} : memref<64x64xf32, #tpu.memory_space<vmem>>, vector<8x32xf32>,
    %299 = vector.extract_strided_slice %295 {offsets = [0, 32], sizes = [8, 32], strides = [1, 1]} : vector<8x64xf32> to vector<8x32xf32>
    %300 = arith.index_cast %270 : i32 to index
    %c32_101 = arith.constant 32 : index
    %301 = vector.load %arg13[%300, %c32_101] : memref<64x64xf32, #tpu.memory_space<vmem>>, vector<8x32xf32>
    tpu.vector_store %arg13[%300, %c32_101], %299 {strides = array<i32>} : memref<64x64xf32, #tpu.memory_space<vmem>>, vector<8x32xf32>,
    %c8_i32_102 = arith.constant 8 : i32
    %c0_103 = arith.constant 0 : index
    %c0_104 = arith.constant 0 : index
    %302 = vector.load %arg13[%c0_103, %c0_104] : memref<64x64xf32, #tpu.memory_space<vmem>>, vector<64x64xf32>
    %303 = arith.truncf %302 : vector<64x64xf32> to vector<64x64xbf16>
    %c0_105 = arith.constant 0 : index
    %c0_106 = arith.constant 0 : index
    %304 = vector.load %arg7[%c0_105, %c0_106] : memref<64x256xbf16, #tpu.memory_space<vmem>>, vector<64x256xbf16>
    %cst_107 = arith.constant dense<0.000000e+00> : vector<64x256xf32>
    %305 = tpu.matmul %303, %304, %cst_107 {dimension_numbers = #tpu.dot_dimension_numbers<[1], [0], [0], [1], [0, 0, 1, 1], [], []>} : vector<64x64xbf16>, vector<64x256xbf16>, vector<64x256xf32> -> vector<64x256xf32>
    %c0_108 = arith.constant 0 : index
    %c0_109 = arith.constant 0 : index
    %306 = vector.load %arg9[%c0_108, %c0_109] : memref<1x256xf32, #tpu.memory_space<vmem>>, vector<1x256xf32>
    %307 = vector.broadcast %306 : vector<1x256xf32> to vector<64x256xf32>
    %308 = arith.addf %305, %307 : vector<64x256xf32>
    %c0_110 = arith.constant 0 : index
    %c0_111 = arith.constant 0 : index
    %309 = vector.load %arg14[%c0_110, %c0_111] : memref<64x256xf32, #tpu.memory_space<vmem>>, vector<64x256xf32>
    tpu.vector_store %arg14[%c0_110, %c0_111], %308 {strides = array<i32>} : memref<64x256xf32, #tpu.memory_space<vmem>>, vector<64x256xf32>,
    %c0_112 = arith.constant 0 : index
    %c0_113 = arith.constant 0 : index
    %310 = vector.load %arg8[%c0_112, %c0_113] : memref<64x256xf32, #tpu.memory_space<vmem>>, vector<64x256xf32>
    %c0_114 = arith.constant 0 : index
    %c0_115 = arith.constant 0 : index
    %311 = vector.load %arg10[%c0_114, %c0_115] : memref<8x64xf32, #tpu.memory_space<vmem>>, vector<8x64xf32>
    %c0_116 = arith.constant 0 : index
    %c0_117 = arith.constant 0 : index
    %312 = vector.load %arg11[%c0_116, %c0_117] : memref<8x64xf32, #tpu.memory_space<vmem>>, vector<8x64xf32>
    %c0_i32_118 = arith.constant 0 : i32
    %c8_i32_119 = arith.constant 8 : i32
    %313 = arith.muli %c0_i32_118, %c8_i32_119 : i32
    %314 = tpu.assume_multiple %313, 8 : i32
    %c7_i32_120 = arith.constant 7 : i32
    %315 = arith.subi %c7_i32_120, %c0_i32_118 : i32
    %c8_i32_121 = arith.constant 8 : i32
    %316 = arith.muli %315, %c8_i32_121 : i32
    %317 = tpu.assume_multiple %316, 8 : i32
    %cst_122 = arith.constant dense<0.000000e+00> : vector<8x256xf32>
    %318 = tpu.matmul %311, %310, %cst_122 {dimension_numbers = #tpu.dot_dimension_numbers<[1], [0], [0], [1], [0, 0, 1, 1], [], []>} : vector<8x64xf32>, vector<64x256xf32>, vector<8x256xf32> -> vector<8x256xf32>
    %319 = arith.index_cast %314 : i32 to index
    %c0_123 = arith.constant 0 : index
    %320 = vector.load %arg14[%319, %c0_123] : memref<64x256xf32, #tpu.memory_space<vmem>>, vector<8x256xf32>
    %321 = arith.index_cast %317 : i32 to index
    %c0_124 = arith.constant 0 : index
    %322 = vector.load %arg14[%321, %c0_124] : memref<64x256xf32, #tpu.memory_space<vmem>>, vector<8x256xf32>
    %323 = arith.select %2, %320, %322 : vector<8x256xi1>, vector<8x256xf32>
    %324 = arith.addf %318, %323 : vector<8x256xf32>
    %325 = vector.extract_strided_slice %324 {offsets = [0, 0], sizes = [8, 192], strides = [1, 1]} : vector<8x256xf32> to vector<8x192xf32>
    %cst_125 = arith.constant 5.000000e-01 : f32
    %326 = vector.broadcast %cst_125 : f32 to vector<8x192xf32>
    %327 = arith.mulf %326, %325 : vector<8x192xf32>
    %328 = math.tanh %327 : vector<8x192xf32>
    %cst_126 = arith.constant 5.000000e-01 : f32
    %329 = vector.broadcast %cst_126 : f32 to vector<8x192xf32>
    %330 = arith.mulf %329, %328 : vector<8x192xf32>
    %cst_127 = arith.constant 5.000000e-01 : f32
    %331 = vector.broadcast %cst_127 : f32 to vector<8x192xf32>
    %332 = arith.addf %330, %331 : vector<8x192xf32>
    %333 = vector.extract_strided_slice %324 {offsets = [0, 192], sizes = [8, 64], strides = [1, 1]} : vector<8x256xf32> to vector<8x64xf32>
    %334 = math.tanh %333 : vector<8x64xf32>
    %335 = vector.extract_strided_slice %332 {offsets = [0, 0], sizes = [8, 64], strides = [1, 1]} : vector<8x192xf32> to vector<8x64xf32>
    %336 = vector.extract_strided_slice %332 {offsets = [0, 64], sizes = [8, 64], strides = [1, 1]} : vector<8x192xf32> to vector<8x64xf32>
    %337 = vector.extract_strided_slice %332 {offsets = [0, 128], sizes = [8, 64], strides = [1, 1]} : vector<8x192xf32> to vector<8x64xf32>
    %338 = arith.mulf %336, %312 : vector<8x64xf32>
    %339 = arith.mulf %335, %334 : vector<8x64xf32>
    %340 = arith.addf %338, %339 : vector<8x64xf32>
    %341 = math.tanh %340 : vector<8x64xf32>
    %342 = arith.mulf %337, %341 : vector<8x64xf32>
    %343 = vector.extract_strided_slice %342 {offsets = [0, 0], sizes = [8, 32], strides = [1, 1]} : vector<8x64xf32> to vector<8x32xf32>
    %344 = arith.index_cast %314 : i32 to index
    %c0_128 = arith.constant 0 : index
    %345 = vector.load %arg12[%344, %c0_128] : memref<64x64xf32, #tpu.memory_space<vmem>>, vector<8x32xf32>
    tpu.vector_store %arg12[%344, %c0_128], %343 {strides = array<i32>} : memref<64x64xf32, #tpu.memory_space<vmem>>, vector<8x32xf32>,
    %346 = vector.extract_strided_slice %342 {offsets = [0, 32], sizes = [8, 32], strides = [1, 1]} : vector<8x64xf32> to vector<8x32xf32>
    %347 = arith.index_cast %317 : i32 to index
    %c32_129 = arith.constant 32 : index
    %348 = vector.load %arg12[%347, %c32_129] : memref<64x64xf32, #tpu.memory_space<vmem>>, vector<8x32xf32>
    tpu.vector_store %arg12[%347, %c32_129], %346 {strides = array<i32>} : memref<64x64xf32, #tpu.memory_space<vmem>>, vector<8x32xf32>,
    %c1_i32_130 = arith.constant 1 : i32
    %c8_i32_131 = arith.constant 8 : i32
    %349 = arith.muli %c1_i32_130, %c8_i32_131 : i32
    %350 = tpu.assume_multiple %349, 8 : i32
    %c7_i32_132 = arith.constant 7 : i32
    %351 = arith.subi %c7_i32_132, %c1_i32_130 : i32
    %c8_i32_133 = arith.constant 8 : i32
    %352 = arith.muli %351, %c8_i32_133 : i32
    %353 = tpu.assume_multiple %352, 8 : i32
    %cst_134 = arith.constant dense<0.000000e+00> : vector<8x256xf32>
    %354 = tpu.matmul %342, %310, %cst_134 {dimension_numbers = #tpu.dot_dimension_numbers<[1], [0], [0], [1], [0, 0, 1, 1], [], []>} : vector<8x64xf32>, vector<64x256xf32>, vector<8x256xf32> -> vector<8x256xf32>
    %355 = arith.index_cast %350 : i32 to index
    %c0_135 = arith.constant 0 : index
    %356 = vector.load %arg14[%355, %c0_135] : memref<64x256xf32, #tpu.memory_space<vmem>>, vector<8x256xf32>
    %357 = arith.index_cast %353 : i32 to index
    %c0_136 = arith.constant 0 : index
    %358 = vector.load %arg14[%357, %c0_136] : memref<64x256xf32, #tpu.memory_space<vmem>>, vector<8x256xf32>
    %359 = arith.select %2, %356, %358 : vector<8x256xi1>, vector<8x256xf32>
    %360 = arith.addf %354, %359 : vector<8x256xf32>
    %361 = vector.extract_strided_slice %360 {offsets = [0, 0], sizes = [8, 192], strides = [1, 1]} : vector<8x256xf32> to vector<8x192xf32>
    %cst_137 = arith.constant 5.000000e-01 : f32
    %362 = vector.broadcast %cst_137 : f32 to vector<8x192xf32>
    %363 = arith.mulf %362, %361 : vector<8x192xf32>
    %364 = math.tanh %363 : vector<8x192xf32>
    %cst_138 = arith.constant 5.000000e-01 : f32
    %365 = vector.broadcast %cst_138 : f32 to vector<8x192xf32>
    %366 = arith.mulf %365, %364 : vector<8x192xf32>
    %cst_139 = arith.constant 5.000000e-01 : f32
    %367 = vector.broadcast %cst_139 : f32 to vector<8x192xf32>
    %368 = arith.addf %366, %367 : vector<8x192xf32>
    %369 = vector.extract_strided_slice %360 {offsets = [0, 192], sizes = [8, 64], strides = [1, 1]} : vector<8x256xf32> to vector<8x64xf32>
    %370 = math.tanh %369 : vector<8x64xf32>
    %371 = vector.extract_strided_slice %368 {offsets = [0, 0], sizes = [8, 64], strides = [1, 1]} : vector<8x192xf32> to vector<8x64xf32>
    %372 = vector.extract_strided_slice %368 {offsets = [0, 64], sizes = [8, 64], strides = [1, 1]} : vector<8x192xf32> to vector<8x64xf32>
    %373 = vector.extract_strided_slice %368 {offsets = [0, 128], sizes = [8, 64], strides = [1, 1]} : vector<8x192xf32> to vector<8x64xf32>
    %374 = arith.mulf %372, %340 : vector<8x64xf32>
    %375 = arith.mulf %371, %370 : vector<8x64xf32>
    %376 = arith.addf %374, %375 : vector<8x64xf32>
    %377 = math.tanh %376 : vector<8x64xf32>
    %378 = arith.mulf %373, %377 : vector<8x64xf32>
    %379 = vector.extract_strided_slice %378 {offsets = [0, 0], sizes = [8, 32], strides = [1, 1]} : vector<8x64xf32> to vector<8x32xf32>
    %380 = arith.index_cast %350 : i32 to index
    %c0_140 = arith.constant 0 : index
    %381 = vector.load %arg12[%380, %c0_140] : memref<64x64xf32, #tpu.memory_space<vmem>>, vector<8x32xf32>
    tpu.vector_store %arg12[%380, %c0_140], %379 {strides = array<i32>} : memref<64x64xf32, #tpu.memory_space<vmem>>, vector<8x32xf32>,
    %382 = vector.extract_strided_slice %378 {offsets = [0, 32], sizes = [8, 32], strides = [1, 1]} : vector<8x64xf32> to vector<8x32xf32>
    %383 = arith.index_cast %353 : i32 to index
    %c32_141 = arith.constant 32 : index
    %384 = vector.load %arg12[%383, %c32_141] : memref<64x64xf32, #tpu.memory_space<vmem>>, vector<8x32xf32>
    tpu.vector_store %arg12[%383, %c32_141], %382 {strides = array<i32>} : memref<64x64xf32, #tpu.memory_space<vmem>>, vector<8x32xf32>,
    %c2_i32_142 = arith.constant 2 : i32
    %c8_i32_143 = arith.constant 8 : i32
    %385 = arith.muli %c2_i32_142, %c8_i32_143 : i32
    %386 = tpu.assume_multiple %385, 8 : i32
    %c7_i32_144 = arith.constant 7 : i32
    %387 = arith.subi %c7_i32_144, %c2_i32_142 : i32
    %c8_i32_145 = arith.constant 8 : i32
    %388 = arith.muli %387, %c8_i32_145 : i32
    %389 = tpu.assume_multiple %388, 8 : i32
    %cst_146 = arith.constant dense<0.000000e+00> : vector<8x256xf32>
    %390 = tpu.matmul %378, %310, %cst_146 {dimension_numbers = #tpu.dot_dimension_numbers<[1], [0], [0], [1], [0, 0, 1, 1], [], []>} : vector<8x64xf32>, vector<64x256xf32>, vector<8x256xf32> -> vector<8x256xf32>
    %391 = arith.index_cast %386 : i32 to index
    %c0_147 = arith.constant 0 : index
    %392 = vector.load %arg14[%391, %c0_147] : memref<64x256xf32, #tpu.memory_space<vmem>>, vector<8x256xf32>
    %393 = arith.index_cast %389 : i32 to index
    %c0_148 = arith.constant 0 : index
    %394 = vector.load %arg14[%393, %c0_148] : memref<64x256xf32, #tpu.memory_space<vmem>>, vector<8x256xf32>
    %395 = arith.select %2, %392, %394 : vector<8x256xi1>, vector<8x256xf32>
    %396 = arith.addf %390, %395 : vector<8x256xf32>
    %397 = vector.extract_strided_slice %396 {offsets = [0, 0], sizes = [8, 192], strides = [1, 1]} : vector<8x256xf32> to vector<8x192xf32>
    %cst_149 = arith.constant 5.000000e-01 : f32
    %398 = vector.broadcast %cst_149 : f32 to vector<8x192xf32>
    %399 = arith.mulf %398, %397 : vector<8x192xf32>
    %400 = math.tanh %399 : vector<8x192xf32>
    %cst_150 = arith.constant 5.000000e-01 : f32
    %401 = vector.broadcast %cst_150 : f32 to vector<8x192xf32>
    %402 = arith.mulf %401, %400 : vector<8x192xf32>
    %cst_151 = arith.constant 5.000000e-01 : f32
    %403 = vector.broadcast %cst_151 : f32 to vector<8x192xf32>
    %404 = arith.addf %402, %403 : vector<8x192xf32>
    %405 = vector.extract_strided_slice %396 {offsets = [0, 192], sizes = [8, 64], strides = [1, 1]} : vector<8x256xf32> to vector<8x64xf32>
    %406 = math.tanh %405 : vector<8x64xf32>
    %407 = vector.extract_strided_slice %404 {offsets = [0, 0], sizes = [8, 64], strides = [1, 1]} : vector<8x192xf32> to vector<8x64xf32>
    %408 = vector.extract_strided_slice %404 {offsets = [0, 64], sizes = [8, 64], strides = [1, 1]} : vector<8x192xf32> to vector<8x64xf32>
    %409 = vector.extract_strided_slice %404 {offsets = [0, 128], sizes = [8, 64], strides = [1, 1]} : vector<8x192xf32> to vector<8x64xf32>
    %410 = arith.mulf %408, %376 : vector<8x64xf32>
    %411 = arith.mulf %407, %406 : vector<8x64xf32>
    %412 = arith.addf %410, %411 : vector<8x64xf32>
    %413 = math.tanh %412 : vector<8x64xf32>
    %414 = arith.mulf %409, %413 : vector<8x64xf32>
    %415 = vector.extract_strided_slice %414 {offsets = [0, 0], sizes = [8, 32], strides = [1, 1]} : vector<8x64xf32> to vector<8x32xf32>
    %416 = arith.index_cast %386 : i32 to index
    %c0_152 = arith.constant 0 : index
    %417 = vector.load %arg12[%416, %c0_152] : memref<64x64xf32, #tpu.memory_space<vmem>>, vector<8x32xf32>
    tpu.vector_store %arg12[%416, %c0_152], %415 {strides = array<i32>} : memref<64x64xf32, #tpu.memory_space<vmem>>, vector<8x32xf32>,
    %418 = vector.extract_strided_slice %414 {offsets = [0, 32], sizes = [8, 32], strides = [1, 1]} : vector<8x64xf32> to vector<8x32xf32>
    %419 = arith.index_cast %389 : i32 to index
    %c32_153 = arith.constant 32 : index
    %420 = vector.load %arg12[%419, %c32_153] : memref<64x64xf32, #tpu.memory_space<vmem>>, vector<8x32xf32>
    tpu.vector_store %arg12[%419, %c32_153], %418 {strides = array<i32>} : memref<64x64xf32, #tpu.memory_space<vmem>>, vector<8x32xf32>,
    %c3_i32_154 = arith.constant 3 : i32
    %c8_i32_155 = arith.constant 8 : i32
    %421 = arith.muli %c3_i32_154, %c8_i32_155 : i32
    %422 = tpu.assume_multiple %421, 8 : i32
    %c7_i32_156 = arith.constant 7 : i32
    %423 = arith.subi %c7_i32_156, %c3_i32_154 : i32
    %c8_i32_157 = arith.constant 8 : i32
    %424 = arith.muli %423, %c8_i32_157 : i32
    %425 = tpu.assume_multiple %424, 8 : i32
    %cst_158 = arith.constant dense<0.000000e+00> : vector<8x256xf32>
    %426 = tpu.matmul %414, %310, %cst_158 {dimension_numbers = #tpu.dot_dimension_numbers<[1], [0], [0], [1], [0, 0, 1, 1], [], []>} : vector<8x64xf32>, vector<64x256xf32>, vector<8x256xf32> -> vector<8x256xf32>
    %427 = arith.index_cast %422 : i32 to index
    %c0_159 = arith.constant 0 : index
    %428 = vector.load %arg14[%427, %c0_159] : memref<64x256xf32, #tpu.memory_space<vmem>>, vector<8x256xf32>
    %429 = arith.index_cast %425 : i32 to index
    %c0_160 = arith.constant 0 : index
    %430 = vector.load %arg14[%429, %c0_160] : memref<64x256xf32, #tpu.memory_space<vmem>>, vector<8x256xf32>
    %431 = arith.select %2, %428, %430 : vector<8x256xi1>, vector<8x256xf32>
    %432 = arith.addf %426, %431 : vector<8x256xf32>
    %433 = vector.extract_strided_slice %432 {offsets = [0, 0], sizes = [8, 192], strides = [1, 1]} : vector<8x256xf32> to vector<8x192xf32>
    %cst_161 = arith.constant 5.000000e-01 : f32
    %434 = vector.broadcast %cst_161 : f32 to vector<8x192xf32>
    %435 = arith.mulf %434, %433 : vector<8x192xf32>
    %436 = math.tanh %435 : vector<8x192xf32>
    %cst_162 = arith.constant 5.000000e-01 : f32
    %437 = vector.broadcast %cst_162 : f32 to vector<8x192xf32>
    %438 = arith.mulf %437, %436 : vector<8x192xf32>
    %cst_163 = arith.constant 5.000000e-01 : f32
    %439 = vector.broadcast %cst_163 : f32 to vector<8x192xf32>
    %440 = arith.addf %438, %439 : vector<8x192xf32>
    %441 = vector.extract_strided_slice %432 {offsets = [0, 192], sizes = [8, 64], strides = [1, 1]} : vector<8x256xf32> to vector<8x64xf32>
    %442 = math.tanh %441 : vector<8x64xf32>
    %443 = vector.extract_strided_slice %440 {offsets = [0, 0], sizes = [8, 64], strides = [1, 1]} : vector<8x192xf32> to vector<8x64xf32>
    %444 = vector.extract_strided_slice %440 {offsets = [0, 64], sizes = [8, 64], strides = [1, 1]} : vector<8x192xf32> to vector<8x64xf32>
    %445 = vector.extract_strided_slice %440 {offsets = [0, 128], sizes = [8, 64], strides = [1, 1]} : vector<8x192xf32> to vector<8x64xf32>
    %446 = arith.mulf %444, %412 : vector<8x64xf32>
    %447 = arith.mulf %443, %442 : vector<8x64xf32>
    %448 = arith.addf %446, %447 : vector<8x64xf32>
    %449 = math.tanh %448 : vector<8x64xf32>
    %450 = arith.mulf %445, %449 : vector<8x64xf32>
    %451 = vector.extract_strided_slice %450 {offsets = [0, 0], sizes = [8, 32], strides = [1, 1]} : vector<8x64xf32> to vector<8x32xf32>
    %452 = arith.index_cast %422 : i32 to index
    %c0_164 = arith.constant 0 : index
    %453 = vector.load %arg12[%452, %c0_164] : memref<64x64xf32, #tpu.memory_space<vmem>>, vector<8x32xf32>
    tpu.vector_store %arg12[%452, %c0_164], %451 {strides = array<i32>} : memref<64x64xf32, #tpu.memory_space<vmem>>, vector<8x32xf32>,
    %454 = vector.extract_strided_slice %450 {offsets = [0, 32], sizes = [8, 32], strides = [1, 1]} : vector<8x64xf32> to vector<8x32xf32>
    %455 = arith.index_cast %425 : i32 to index
    %c32_165 = arith.constant 32 : index
    %456 = vector.load %arg12[%455, %c32_165] : memref<64x64xf32, #tpu.memory_space<vmem>>, vector<8x32xf32>
    tpu.vector_store %arg12[%455, %c32_165], %454 {strides = array<i32>} : memref<64x64xf32, #tpu.memory_space<vmem>>, vector<8x32xf32>,
    %c4_i32_166 = arith.constant 4 : i32
    %c8_i32_167 = arith.constant 8 : i32
    %457 = arith.muli %c4_i32_166, %c8_i32_167 : i32
    %458 = tpu.assume_multiple %457, 8 : i32
    %c7_i32_168 = arith.constant 7 : i32
    %459 = arith.subi %c7_i32_168, %c4_i32_166 : i32
    %c8_i32_169 = arith.constant 8 : i32
    %460 = arith.muli %459, %c8_i32_169 : i32
    %461 = tpu.assume_multiple %460, 8 : i32
    %cst_170 = arith.constant dense<0.000000e+00> : vector<8x256xf32>
    %462 = tpu.matmul %450, %310, %cst_170 {dimension_numbers = #tpu.dot_dimension_numbers<[1], [0], [0], [1], [0, 0, 1, 1], [], []>} : vector<8x64xf32>, vector<64x256xf32>, vector<8x256xf32> -> vector<8x256xf32>
    %463 = arith.index_cast %458 : i32 to index
    %c0_171 = arith.constant 0 : index
    %464 = vector.load %arg14[%463, %c0_171] : memref<64x256xf32, #tpu.memory_space<vmem>>, vector<8x256xf32>
    %465 = arith.index_cast %461 : i32 to index
    %c0_172 = arith.constant 0 : index
    %466 = vector.load %arg14[%465, %c0_172] : memref<64x256xf32, #tpu.memory_space<vmem>>, vector<8x256xf32>
    %467 = arith.select %2, %464, %466 : vector<8x256xi1>, vector<8x256xf32>
    %468 = arith.addf %462, %467 : vector<8x256xf32>
    %469 = vector.extract_strided_slice %468 {offsets = [0, 0], sizes = [8, 192], strides = [1, 1]} : vector<8x256xf32> to vector<8x192xf32>
    %cst_173 = arith.constant 5.000000e-01 : f32
    %470 = vector.broadcast %cst_173 : f32 to vector<8x192xf32>
    %471 = arith.mulf %470, %469 : vector<8x192xf32>
    %472 = math.tanh %471 : vector<8x192xf32>
    %cst_174 = arith.constant 5.000000e-01 : f32
    %473 = vector.broadcast %cst_174 : f32 to vector<8x192xf32>
    %474 = arith.mulf %473, %472 : vector<8x192xf32>
    %cst_175 = arith.constant 5.000000e-01 : f32
    %475 = vector.broadcast %cst_175 : f32 to vector<8x192xf32>
    %476 = arith.addf %474, %475 : vector<8x192xf32>
    %477 = vector.extract_strided_slice %468 {offsets = [0, 192], sizes = [8, 64], strides = [1, 1]} : vector<8x256xf32> to vector<8x64xf32>
    %478 = math.tanh %477 : vector<8x64xf32>
    %479 = vector.extract_strided_slice %476 {offsets = [0, 0], sizes = [8, 64], strides = [1, 1]} : vector<8x192xf32> to vector<8x64xf32>
    %480 = vector.extract_strided_slice %476 {offsets = [0, 64], sizes = [8, 64], strides = [1, 1]} : vector<8x192xf32> to vector<8x64xf32>
    %481 = vector.extract_strided_slice %476 {offsets = [0, 128], sizes = [8, 64], strides = [1, 1]} : vector<8x192xf32> to vector<8x64xf32>
    %482 = arith.mulf %480, %448 : vector<8x64xf32>
    %483 = arith.mulf %479, %478 : vector<8x64xf32>
    %484 = arith.addf %482, %483 : vector<8x64xf32>
    %485 = math.tanh %484 : vector<8x64xf32>
    %486 = arith.mulf %481, %485 : vector<8x64xf32>
    %487 = vector.extract_strided_slice %486 {offsets = [0, 0], sizes = [8, 32], strides = [1, 1]} : vector<8x64xf32> to vector<8x32xf32>
    %488 = arith.index_cast %458 : i32 to index
    %c0_176 = arith.constant 0 : index
    %489 = vector.load %arg12[%488, %c0_176] : memref<64x64xf32, #tpu.memory_space<vmem>>, vector<8x32xf32>
    tpu.vector_store %arg12[%488, %c0_176], %487 {strides = array<i32>} : memref<64x64xf32, #tpu.memory_space<vmem>>, vector<8x32xf32>,
    %490 = vector.extract_strided_slice %486 {offsets = [0, 32], sizes = [8, 32], strides = [1, 1]} : vector<8x64xf32> to vector<8x32xf32>
    %491 = arith.index_cast %461 : i32 to index
    %c32_177 = arith.constant 32 : index
    %492 = vector.load %arg12[%491, %c32_177] : memref<64x64xf32, #tpu.memory_space<vmem>>, vector<8x32xf32>
    tpu.vector_store %arg12[%491, %c32_177], %490 {strides = array<i32>} : memref<64x64xf32, #tpu.memory_space<vmem>>, vector<8x32xf32>,
    %c5_i32_178 = arith.constant 5 : i32
    %c8_i32_179 = arith.constant 8 : i32
    %493 = arith.muli %c5_i32_178, %c8_i32_179 : i32
    %494 = tpu.assume_multiple %493, 8 : i32
    %c7_i32_180 = arith.constant 7 : i32
    %495 = arith.subi %c7_i32_180, %c5_i32_178 : i32
    %c8_i32_181 = arith.constant 8 : i32
    %496 = arith.muli %495, %c8_i32_181 : i32
    %497 = tpu.assume_multiple %496, 8 : i32
    %cst_182 = arith.constant dense<0.000000e+00> : vector<8x256xf32>
    %498 = tpu.matmul %486, %310, %cst_182 {dimension_numbers = #tpu.dot_dimension_numbers<[1], [0], [0], [1], [0, 0, 1, 1], [], []>} : vector<8x64xf32>, vector<64x256xf32>, vector<8x256xf32> -> vector<8x256xf32>
    %499 = arith.index_cast %494 : i32 to index
    %c0_183 = arith.constant 0 : index
    %500 = vector.load %arg14[%499, %c0_183] : memref<64x256xf32, #tpu.memory_space<vmem>>, vector<8x256xf32>
    %501 = arith.index_cast %497 : i32 to index
    %c0_184 = arith.constant 0 : index
    %502 = vector.load %arg14[%501, %c0_184] : memref<64x256xf32, #tpu.memory_space<vmem>>, vector<8x256xf32>
    %503 = arith.select %2, %500, %502 : vector<8x256xi1>, vector<8x256xf32>
    %504 = arith.addf %498, %503 : vector<8x256xf32>
    %505 = vector.extract_strided_slice %504 {offsets = [0, 0], sizes = [8, 192], strides = [1, 1]} : vector<8x256xf32> to vector<8x192xf32>
    %cst_185 = arith.constant 5.000000e-01 : f32
    %506 = vector.broadcast %cst_185 : f32 to vector<8x192xf32>
    %507 = arith.mulf %506, %505 : vector<8x192xf32>
    %508 = math.tanh %507 : vector<8x192xf32>
    %cst_186 = arith.constant 5.000000e-01 : f32
    %509 = vector.broadcast %cst_186 : f32 to vector<8x192xf32>
    %510 = arith.mulf %509, %508 : vector<8x192xf32>
    %cst_187 = arith.constant 5.000000e-01 : f32
    %511 = vector.broadcast %cst_187 : f32 to vector<8x192xf32>
    %512 = arith.addf %510, %511 : vector<8x192xf32>
    %513 = vector.extract_strided_slice %504 {offsets = [0, 192], sizes = [8, 64], strides = [1, 1]} : vector<8x256xf32> to vector<8x64xf32>
    %514 = math.tanh %513 : vector<8x64xf32>
    %515 = vector.extract_strided_slice %512 {offsets = [0, 0], sizes = [8, 64], strides = [1, 1]} : vector<8x192xf32> to vector<8x64xf32>
    %516 = vector.extract_strided_slice %512 {offsets = [0, 64], sizes = [8, 64], strides = [1, 1]} : vector<8x192xf32> to vector<8x64xf32>
    %517 = vector.extract_strided_slice %512 {offsets = [0, 128], sizes = [8, 64], strides = [1, 1]} : vector<8x192xf32> to vector<8x64xf32>
    %518 = arith.mulf %516, %484 : vector<8x64xf32>
    %519 = arith.mulf %515, %514 : vector<8x64xf32>
    %520 = arith.addf %518, %519 : vector<8x64xf32>
    %521 = math.tanh %520 : vector<8x64xf32>
    %522 = arith.mulf %517, %521 : vector<8x64xf32>
    %523 = vector.extract_strided_slice %522 {offsets = [0, 0], sizes = [8, 32], strides = [1, 1]} : vector<8x64xf32> to vector<8x32xf32>
    %524 = arith.index_cast %494 : i32 to index
    %c0_188 = arith.constant 0 : index
    %525 = vector.load %arg12[%524, %c0_188] : memref<64x64xf32, #tpu.memory_space<vmem>>, vector<8x32xf32>
    tpu.vector_store %arg12[%524, %c0_188], %523 {strides = array<i32>} : memref<64x64xf32, #tpu.memory_space<vmem>>, vector<8x32xf32>,
    %526 = vector.extract_strided_slice %522 {offsets = [0, 32], sizes = [8, 32], strides = [1, 1]} : vector<8x64xf32> to vector<8x32xf32>
    %527 = arith.index_cast %497 : i32 to index
    %c32_189 = arith.constant 32 : index
    %528 = vector.load %arg12[%527, %c32_189] : memref<64x64xf32, #tpu.memory_space<vmem>>, vector<8x32xf32>
    tpu.vector_store %arg12[%527, %c32_189], %526 {strides = array<i32>} : memref<64x64xf32, #tpu.memory_space<vmem>>, vector<8x32xf32>,
    %c6_i32_190 = arith.constant 6 : i32
    %c8_i32_191 = arith.constant 8 : i32
    %529 = arith.muli %c6_i32_190, %c8_i32_191 : i32
    %530 = tpu.assume_multiple %529, 8 : i32
    %c7_i32_192 = arith.constant 7 : i32
    %531 = arith.subi %c7_i32_192, %c6_i32_190 : i32
    %c8_i32_193 = arith.constant 8 : i32
    %532 = arith.muli %531, %c8_i32_193 : i32
    %533 = tpu.assume_multiple %532, 8 : i32
    %cst_194 = arith.constant dense<0.000000e+00> : vector<8x256xf32>
    %534 = tpu.matmul %522, %310, %cst_194 {dimension_numbers = #tpu.dot_dimension_numbers<[1], [0], [0], [1], [0, 0, 1, 1], [], []>} : vector<8x64xf32>, vector<64x256xf32>, vector<8x256xf32> -> vector<8x256xf32>
    %535 = arith.index_cast %530 : i32 to index
    %c0_195 = arith.constant 0 : index
    %536 = vector.load %arg14[%535, %c0_195] : memref<64x256xf32, #tpu.memory_space<vmem>>, vector<8x256xf32>
    %537 = arith.index_cast %533 : i32 to index
    %c0_196 = arith.constant 0 : index
    %538 = vector.load %arg14[%537, %c0_196] : memref<64x256xf32, #tpu.memory_space<vmem>>, vector<8x256xf32>
    %539 = arith.select %2, %536, %538 : vector<8x256xi1>, vector<8x256xf32>
    %540 = arith.addf %534, %539 : vector<8x256xf32>
    %541 = vector.extract_strided_slice %540 {offsets = [0, 0], sizes = [8, 192], strides = [1, 1]} : vector<8x256xf32> to vector<8x192xf32>
    %cst_197 = arith.constant 5.000000e-01 : f32
    %542 = vector.broadcast %cst_197 : f32 to vector<8x192xf32>
    %543 = arith.mulf %542, %541 : vector<8x192xf32>
    %544 = math.tanh %543 : vector<8x192xf32>
    %cst_198 = arith.constant 5.000000e-01 : f32
    %545 = vector.broadcast %cst_198 : f32 to vector<8x192xf32>
    %546 = arith.mulf %545, %544 : vector<8x192xf32>
    %cst_199 = arith.constant 5.000000e-01 : f32
    %547 = vector.broadcast %cst_199 : f32 to vector<8x192xf32>
    %548 = arith.addf %546, %547 : vector<8x192xf32>
    %549 = vector.extract_strided_slice %540 {offsets = [0, 192], sizes = [8, 64], strides = [1, 1]} : vector<8x256xf32> to vector<8x64xf32>
    %550 = math.tanh %549 : vector<8x64xf32>
    %551 = vector.extract_strided_slice %548 {offsets = [0, 0], sizes = [8, 64], strides = [1, 1]} : vector<8x192xf32> to vector<8x64xf32>
    %552 = vector.extract_strided_slice %548 {offsets = [0, 64], sizes = [8, 64], strides = [1, 1]} : vector<8x192xf32> to vector<8x64xf32>
    %553 = vector.extract_strided_slice %548 {offsets = [0, 128], sizes = [8, 64], strides = [1, 1]} : vector<8x192xf32> to vector<8x64xf32>
    %554 = arith.mulf %552, %520 : vector<8x64xf32>
    %555 = arith.mulf %551, %550 : vector<8x64xf32>
    %556 = arith.addf %554, %555 : vector<8x64xf32>
    %557 = math.tanh %556 : vector<8x64xf32>
    %558 = arith.mulf %553, %557 : vector<8x64xf32>
    %559 = vector.extract_strided_slice %558 {offsets = [0, 0], sizes = [8, 32], strides = [1, 1]} : vector<8x64xf32> to vector<8x32xf32>
    %560 = arith.index_cast %530 : i32 to index
    %c0_200 = arith.constant 0 : index
    %561 = vector.load %arg12[%560, %c0_200] : memref<64x64xf32, #tpu.memory_space<vmem>>, vector<8x32xf32>
    tpu.vector_store %arg12[%560, %c0_200], %559 {strides = array<i32>} : memref<64x64xf32, #tpu.memory_space<vmem>>, vector<8x32xf32>,
    %562 = vector.extract_strided_slice %558 {offsets = [0, 32], sizes = [8, 32], strides = [1, 1]} : vector<8x64xf32> to vector<8x32xf32>
    %563 = arith.index_cast %533 : i32 to index
    %c32_201 = arith.constant 32 : index
    %564 = vector.load %arg12[%563, %c32_201] : memref<64x64xf32, #tpu.memory_space<vmem>>, vector<8x32xf32>
    tpu.vector_store %arg12[%563, %c32_201], %562 {strides = array<i32>} : memref<64x64xf32, #tpu.memory_space<vmem>>, vector<8x32xf32>,
    %c7_i32_202 = arith.constant 7 : i32
    %c8_i32_203 = arith.constant 8 : i32
    %565 = arith.muli %c7_i32_202, %c8_i32_203 : i32
    %566 = tpu.assume_multiple %565, 8 : i32
    %c7_i32_204 = arith.constant 7 : i32
    %567 = arith.subi %c7_i32_204, %c7_i32_202 : i32
    %c8_i32_205 = arith.constant 8 : i32
    %568 = arith.muli %567, %c8_i32_205 : i32
    %569 = tpu.assume_multiple %568, 8 : i32
    %cst_206 = arith.constant dense<0.000000e+00> : vector<8x256xf32>
    %570 = tpu.matmul %558, %310, %cst_206 {dimension_numbers = #tpu.dot_dimension_numbers<[1], [0], [0], [1], [0, 0, 1, 1], [], []>} : vector<8x64xf32>, vector<64x256xf32>, vector<8x256xf32> -> vector<8x256xf32>
    %571 = arith.index_cast %566 : i32 to index
    %c0_207 = arith.constant 0 : index
    %572 = vector.load %arg14[%571, %c0_207] : memref<64x256xf32, #tpu.memory_space<vmem>>, vector<8x256xf32>
    %573 = arith.index_cast %569 : i32 to index
    %c0_208 = arith.constant 0 : index
    %574 = vector.load %arg14[%573, %c0_208] : memref<64x256xf32, #tpu.memory_space<vmem>>, vector<8x256xf32>
    %575 = arith.select %2, %572, %574 : vector<8x256xi1>, vector<8x256xf32>
    %576 = arith.addf %570, %575 : vector<8x256xf32>
    %577 = vector.extract_strided_slice %576 {offsets = [0, 0], sizes = [8, 192], strides = [1, 1]} : vector<8x256xf32> to vector<8x192xf32>
    %cst_209 = arith.constant 5.000000e-01 : f32
    %578 = vector.broadcast %cst_209 : f32 to vector<8x192xf32>
    %579 = arith.mulf %578, %577 : vector<8x192xf32>
    %580 = math.tanh %579 : vector<8x192xf32>
    %cst_210 = arith.constant 5.000000e-01 : f32
    %581 = vector.broadcast %cst_210 : f32 to vector<8x192xf32>
    %582 = arith.mulf %581, %580 : vector<8x192xf32>
    %cst_211 = arith.constant 5.000000e-01 : f32
    %583 = vector.broadcast %cst_211 : f32 to vector<8x192xf32>
    %584 = arith.addf %582, %583 : vector<8x192xf32>
    %585 = vector.extract_strided_slice %576 {offsets = [0, 192], sizes = [8, 64], strides = [1, 1]} : vector<8x256xf32> to vector<8x64xf32>
    %586 = math.tanh %585 : vector<8x64xf32>
    %587 = vector.extract_strided_slice %584 {offsets = [0, 0], sizes = [8, 64], strides = [1, 1]} : vector<8x192xf32> to vector<8x64xf32>
    %588 = vector.extract_strided_slice %584 {offsets = [0, 64], sizes = [8, 64], strides = [1, 1]} : vector<8x192xf32> to vector<8x64xf32>
    %589 = vector.extract_strided_slice %584 {offsets = [0, 128], sizes = [8, 64], strides = [1, 1]} : vector<8x192xf32> to vector<8x64xf32>
    %590 = arith.mulf %588, %556 : vector<8x64xf32>
    %591 = arith.mulf %587, %586 : vector<8x64xf32>
    %592 = arith.addf %590, %591 : vector<8x64xf32>
    %593 = math.tanh %592 : vector<8x64xf32>
    %594 = arith.mulf %589, %593 : vector<8x64xf32>
    %595 = vector.extract_strided_slice %594 {offsets = [0, 0], sizes = [8, 32], strides = [1, 1]} : vector<8x64xf32> to vector<8x32xf32>
    %596 = arith.index_cast %566 : i32 to index
    %c0_212 = arith.constant 0 : index
    %597 = vector.load %arg12[%596, %c0_212] : memref<64x64xf32, #tpu.memory_space<vmem>>, vector<8x32xf32>
    tpu.vector_store %arg12[%596, %c0_212], %595 {strides = array<i32>} : memref<64x64xf32, #tpu.memory_space<vmem>>, vector<8x32xf32>,
    %598 = vector.extract_strided_slice %594 {offsets = [0, 32], sizes = [8, 32], strides = [1, 1]} : vector<8x64xf32> to vector<8x32xf32>
    %599 = arith.index_cast %569 : i32 to index
    %c32_213 = arith.constant 32 : index
    %600 = vector.load %arg12[%599, %c32_213] : memref<64x64xf32, #tpu.memory_space<vmem>>, vector<8x32xf32>
    tpu.vector_store %arg12[%599, %c32_213], %598 {strides = array<i32>} : memref<64x64xf32, #tpu.memory_space<vmem>>, vector<8x32xf32>,
    %c8_i32_214 = arith.constant 8 : i32
    return
  }
}

</mosaic_0001>

<bundles_post_ra>
// kernel: bilstm_forward.1
= control target key start
LH: loop header
LB: loop body
LE: loop exit
PB: predicated region body
PF: predicated region fallthrough
CT: control target
= control target key end

     0   :  { %17 = vsyncpa [#allocation5], 0  ;;  %s3508_s0 = inlined_call_operand.vmem [shape: f32[64,4], index: 0, kind: input, shape index: {}]   ;;  %s3509_s1 = inlined_call_operand.vmem [shape: f32[8,256], index: 1, kind: input, shape index: {}]   ;;  %s3510_s2 = inlined_call_operand.hbm [shape: bf16[4,256], index: 2, kind: input, shape index: {}]   ;;  %s3511_s3 = inlined_call_operand.vmem [shape: f32[64,256], index: 3, kind: input, shape index: {}]   ;;  %s3512_s4 = inlined_call_operand.hbm [shape: f32[1,256], index: 4, kind: input, shape index: {}]   ;;  %s3513_s5 = inlined_call_operand.vmem [shape: f32[8,64], index: 5, kind: input, shape index: {}]   ;;  %s3514_s6 = inlined_call_operand.vmem [shape: f32[8,64], index: 6, kind: input, shape index: {}]   ;;  %s3515_s7 = inlined_call_operand.vmem [shape: bf16[64,256], index: 7, kind: input, shape index: {}]   ;;  %s3516_s8 = inlined_call_operand.vmem [shape: f32[64,256], index: 8, kind: input, shape index: {}]   ;;  %s3517_s9 = inlined_call_operand.hbm [shape: f32[1,256], index: 9, kind: input, shape index: {}]   ;;  %s3518_s10 = inlined_call_operand.vmem [shape: f32[8,64], index: 10, kind: input, shape index: {}]   ;;  %s3519_s11 = inlined_call_operand.vmem [shape: f32[8,64], index: 11, kind: input, shape index: {}]   ;;  %s3520_s12 = inlined_call_operand.vmem [shape: f32[64,64], index: 12, kind: output, shape index: {}]  }
   0x1   :  { %18 = vsyncpa [#allocation7], 0  ;;  %s2743_s21 = smov [#allocation6]   ;;  %s2744_s23 = smov [#allocation4]  }
   0x2   :  { %s41_s22 = sshll.u32 %s2743_s21, 4  ;;  %s29_s24 = sshll.u32 %s2744_s23, 4  ;;  %s42_s22 = int_to_ptr.vmem [resolvable:$true] %s41_s22  ;;  %s30_s24 = int_to_ptr.vmem [resolvable:$true] %s29_s24 }
   0x3   :  { %s2673_s27 = scalar_lea.hbm %s3512_s4, 32 }
   0x4   :  { %p2674_p0 = scmp.ne.s32.totalorder %s3512_s4, %s2673_s27  ;;  %p2677_p1 = scmp.lt.u32.totalorder %s2673_s27, %s3512_s4 }
   0x6   :  { %p2679_p2 = pnand %p2677_p1, %p2674_p0 }
   0x8   :  { %2682 = shalt.err (!%p2679_p2)
}
   0x9   :  { %s2683_s14 = scalar_lea.vmem %s42_s22, 32  ;;  %p2688_p4 = scmp.lt.s32.totalorder %s42_s22, %s42_s22 }
   0xa   :  { %p2684_p3 = scmp.ne.s32.totalorder %s42_s22, %s2683_s14  ;;  %p2689_p5 = scmp.lt.s32.totalorder %s2683_s14, %s2683_s14 }
   0xc   :  { %p2690_p6 = por %p2689_p5, %p2688_p4 }
   0xe   :  { %p2691_p7 = pnand %p2690_p6, %p2684_p3 }
  0x10   :  { %2694 = shalt.err (!%p2691_p7)
}
  0x11   :  { %44 = dma.hbm_to_vmem [thread:$0]  %s3512_s4, 32, %s42_s22, [#allocation7]  }
  0x12   :  { %s2695_s19 = scalar_lea.hbm %s3510_s2, 64 }
  0x13   :  { %p2696_p8 = scmp.ne.s32.totalorder %s3510_s2, %s2695_s19  ;;  %p2699_p9 = scmp.lt.u32.totalorder %s2695_s19, %s3510_s2 }
  0x15   :  { %p2701_p10 = pnand %p2699_p9, %p2696_p8 }
  0x17   :  { %2704 = shalt.err (!%p2701_p10)
}
  0x18   :  { %s2705_s26 = scalar_lea.vmem %s30_s24, 64  ;;  %p2710_p12 = scmp.lt.s32.totalorder %s30_s24, %s30_s24 }
  0x19   :  { %p2706_p11 = scmp.ne.s32.totalorder %s30_s24, %s2705_s26  ;;  %p2711_p13 = scmp.lt.s32.totalorder %s2705_s26, %s2705_s26 }
  0x1b   :  { %p2712_p0 = por %p2711_p13, %p2710_p12 }
  0x1d   :  { %p2713_p1 = pnand %p2712_p0, %p2706_p11 }
  0x1f   :  { %2716 = shalt.err (!%p2713_p1)
}
  0x20   :  { %32 = dma.hbm_to_vmem [thread:$0]  %s3510_s2, 64, %s30_s24, [#allocation5]  }
  0x21   :  { %s2745_s27 = smov [#allocation8]   ;;  %s2717_s13 = scalar_lea.hbm %s3517_s9, 32 }
  0x22   :  { %s59_s28 = sshll.u32 %s2745_s27, 4  ;;  %p2718_p2 = scmp.ne.s32.totalorder %s3517_s9, %s2717_s13  ;;  %s60_s28 = int_to_ptr.vmem [resolvable:$true] %s59_s28 }
  0x23   :  { %p2721_p3 = scmp.lt.u32.totalorder %s2717_s13, %s3517_s9 }
  0x25   :  { %p2723_p4 = pnand %p2721_p3, %p2718_p2 }
  0x27   :  { %2726 = shalt.err (!%p2723_p4)
}
  0x28   :  { %s2727_s18 = scalar_lea.vmem %s60_s28, 32  ;;  %p2732_p6 = scmp.lt.s32.totalorder %s60_s28, %s60_s28 }
  0x29   :  { %p2728_p5 = scmp.ne.s32.totalorder %s60_s28, %s2727_s18  ;;  %p2733_p7 = scmp.lt.s32.totalorder %s2727_s18, %s2727_s18 }
  0x2b   :  { %p2734_p8 = por %p2733_p7, %p2732_p6 }
  0x2d   :  { %p2735_p9 = pnand %p2734_p8, %p2728_p5 }
  0x2f   :  { %2738 = shalt.err (!%p2735_p9)
}
  0x30   :  { %62 = dma.hbm_to_vmem [thread:$0]  %s3517_s9, 32, %s60_s28, [#allocation7]  }
  0x31   :  { %2739 = dma.done.wait [#allocation5], 64  }
  0x32   :  { %2740 = vsyncadd [#allocation5], 4294967232 }
  0x33   :  { %2741 = dma.done.wait [#allocation7], 64  }
  0x34   :  { %2742 = vsyncadd [#allocation7], 4294967232  ;;  %v2746_v0 = vmov 0   ;;  %v2747_v1 = vmov 0.0   ;;  %vm128_vm0 = vcmask 1041408   ;;  %v81_v3 = vld [vmem:[%s3508_s0] sm:$0xff]  ;;  %v96_v42 = vlaneseq }
  0x35   :  { %167 = vmatprep.mubr.bf16.mxu0 %v2746_v0  ;;  %322 = vmatprep.mubr.f32.mxu1 %v2747_v1  ;;  %v2223_v2 = vld.sshfl [vmem:[#allocation4] sm:$0x33 pattern:$0x76325410]  ;;  %v82_v4 = vld [vmem:[%s3508_s0 + $0x8] sm:$0xff]  ;;  %v227_v8 = vld [vmem:[%s3511_s3 + $0x18] sm:$0xff] }
  0x36   :  { %v114_v5 = vcombine.high %v2223_v2, %v2223_v2  ;;  %v130_v6 = vsel %vm128_vm0, %v2223_v2, 0  ;;  %v225_v7 = vld [vmem:[%s3511_s3 + $0x8] sm:$0xff]  ;;  %v224_v9 = vld [vmem:[%s3511_s3] sm:$0xff]  ;;  %v226_v10 = vld [vmem:[%s3511_s3 + $0x10] sm:$0xff]  ;;  %v89_v11 = vpack.c.bf16 %v82_v4, %v81_v3  ;;  %vm115_vm1 = vcmask 31744  }
  0x37   :  { %v2870_v12 = vpack.c.bf16 %v227_v8, %v225_v7  ;;  %v2872_v13 = vpack.c.bf16 %v226_v10, %v224_v9  ;;  %v229_v14 = vld [vmem:[%s3511_s3 + $0x28] sm:$0xff]  ;;  %v231_v15 = vld [vmem:[%s3511_s3 + $0x38] sm:$0xff]  ;;  %v228_v16 = vld [vmem:[%s3511_s3 + $0x20] sm:$0xff]  ;;  %vm254_vm2 = vcmask 523264   ;;  %v2979_v43 = vshrl.u32 %v96_v42, 7 }
  0x38   :  { %2224 = vmatprep.subr.msk.bf16.mxu0 %vm128_vm0, %v114_v5  ;;  %v230_v17 = vld [vmem:[%s3511_s3 + $0x30] sm:$0xff]  ;;  %v2887_v18 = vpack.c.bf16 %v231_v15, %v229_v14  ;;  %v233_v19 = vld [vmem:[%s3511_s3 + $0x48] sm:$0xff]  ;;  %v235_v20 = vld [vmem:[%s3511_s3 + $0x58] sm:$0xff]  ;;  %vm359_vm5 = vcmask 261120   ;;  %vm362_vm6 = vcmask 523520  }
  0x39   :  { %136 = vmatpush1.bf16.msra.mxu0 %v130_v6  ;;  %2272 = vmatprep.subr.bf16.mxu1 %v2870_v12  ;;  %v2897_v21 = vpack.c.bf16 %v230_v17, %v228_v16  ;;  %v83_v22 = vld [vmem:[%s3508_s0 + $0x10] sm:$0xff]  ;;  %v2904_v23 = vpack.c.bf16 %v235_v20, %v233_v19  ;;  %v232_v24 = vld [vmem:[%s3511_s3 + $0x40] sm:$0xff]  ;;  %v84_v26 = vld [vmem:[%s3508_s0 + $0x18] sm:$0xff]  ;;  %v98_v44 = vsub.s32 0, %v2979_v43  ;;  %v102_v46 = vsub.s32 1, %v2979_v43 }
  0x3a   :  { %2304 = vmatprep.subr.bf16.mxu0 %v2870_v12  ;;  %2274 = vmatpush1.bf16.msra.mxu1 %v2872_v13  ;;  %v234_v25 = vld [vmem:[%s3511_s3 + $0x50] sm:$0xff]  ;;  %v237_v27 = vld [vmem:[%s3511_s3 + $0x68] sm:$0xff]  ;;  %v239_v28 = vld [vmem:[%s3511_s3 + $0x78] sm:$0xff]  ;;  %v90_v31 = vpack.c.bf16 %v84_v26, %v83_v22 }
  0x3b   :  { %2276 = vmatprep.subr.bf16.mxu1 %v2887_v18  ;;  %v236_v29 = vld [vmem:[%s3511_s3 + $0x60] sm:$0xff]  ;;  %v2928_v30 = vpack.c.bf16 %v234_v25, %v232_v24  ;;  %v2931_v32 = vpack.c.bf16 %v239_v28, %v237_v27  ;;  %v238_v33 = vld [vmem:[%s3511_s3 + $0x70] sm:$0xff]  ;;  %v86_v36 = vld [vmem:[%s3508_s0 + $0x28] sm:$0xff] }
  0x3c   :  { %2225 = vmatmul.mubr.msk.bf16.vlgmr.msra.gmra.mrb[0].mxu0 %vm115_vm1, %v89_v11  ;;  %v2939_v34 = vpack.c.bf16 %v238_v33, %v236_v29  ;;  %v85_v35 = vld [vmem:[%s3508_s0 + $0x20] sm:$0xff]  ;;  %v87_v39 = vld [vmem:[%s3508_s0 + $0x30] sm:$0xff]  ;;  %v88_v40 = vld [vmem:[%s3508_s0 + $0x38] sm:$0xff] }
  0x3d   :  { %177 = vmatprep.mubr.bf16.mxu0 %v2746_v0  ;;  %2306 = vmatpush1.bf16.msra.mxu0 %v2872_v13  ;;  %v240_v37 = vld [vmem:[%s3513_s5] sm:$0xff]  ;;  %v91_v38 = vpack.c.bf16 %v86_v36, %v85_v35  ;;  %v92_v41 = vpack.c.bf16 %v88_v40, %v87_v39  ;;  %v2995_v3 = vld [vmem:[%s3509_s1 + $0x8] sm:$0xff] }
  0x3e   :  { %2308 = vmatprep.subr.bf16.mxu0 %v2887_v18  ;;  %2278 = vmatpush1.bf16.msra.mxu1 %v2897_v21  ;;  %v94_v45 = vld [vmem:[#allocation6] sm:$0x3]  ;;  %vm80_vm4 = vcmp.gt.f32.partialorder %v2995_v3, 0.5 }
  0x3f   :  { %2280 = vmatprep.subr.bf16.mxu1 %v2904_v23  ;;  %v99_v48 = vrot.slane %v94_v45, %v98_v44  ;;  %v103_v50 = vrot.slane %v94_v45, %v102_v46  ;;  %v2990_v63 = vld [vmem:[%s3509_s1] sm:$0xff]  ;;  %s2748_s1 = smov 64  }
  0x40   :  { %vm79_vm3 = vcmp.gt.f32.partialorder %v2990_v63, 0.5 }
  0x41   :  { %2310 = vmatpush1.bf16.msra.mxu0 %v2897_v21 }
  0x42   :  { %2312 = vmatprep.subr.bf16.mxu0 %v2904_v23  ;;  %2282 = vmatpush1.bf16.msra.mxu1 %v2928_v30 }
  0x43   :  { %2284 = vmatprep.subr.bf16.mxu1 %v2931_v32 }
  0x44   :  { %2226 = vmatmul.mubr.msk.bf16.gmra.mrb[4].mxu0 %vm115_vm1, %v90_v31 }
  0x45   :  { %187 = vmatprep.mubr.bf16.mxu0 %v2746_v0  ;;  %2314 = vmatpush1.bf16.msra.mxu0 %v2928_v30 }
  0x46   :  { %2316 = vmatprep.subr.bf16.mxu0 %v2931_v32  ;;  %2286 = vmatpush1.bf16.msra.mxu1 %v2939_v34 }
  0x47   :  { %2288 = vmatprep.subr.bf16.mxu1 %v2870_v12 }
  0x49   :  { %2318 = vmatpush1.bf16.msra.mxu0 %v2939_v34  ;;  %2229 = vmatmul.mubr.msk.f32.vlgmr.msra.gmra.mrb[0].mxu1 %vm254_vm2, %v240_v37 }
  0x4a   :  { %2336 = vmatprep.subr.bf16.mxu0 %v2870_v12  ;;  %2290 = vmatpush1.bf16.msra.mxu1 %v2872_v13 }
  0x4b   :  { %443 = vmatprep.mubr.f32.mxu1 %v2747_v1  ;;  %2292 = vmatprep.subr.bf16.mxu1 %v2887_v18 }
  0x4c   :  { %2227 = vmatmul.mubr.msk.bf16.gmra.mrb[8].mxu0 %vm115_vm1, %v91_v38 }
  0x4d   :  { %197 = vmatprep.mubr.bf16.mxu0 %v2746_v0 }
  0x4e   :  { %2294 = vmatpush1.bf16.msra.mxu1 %v2897_v21 }
  0x4f   :  { %2296 = vmatprep.subr.bf16.mxu1 %v2904_v23 }
  0x52   :  { %2298 = vmatpush1.bf16.msra.mxu1 %v2928_v30 }
  0x53   :  { %2300 = vmatprep.subr.bf16.mxu1 %v2931_v32 }
  0x54   :  { %2228 = vmatmul.mubr.msk.bf16.gmra.mrb[12].mxu0 %vm115_vm1, %v92_v41 }
  0x55   :  { %559 = vmatprep.mubr.f32.mxu0 %v2747_v1 }
  0x56   :  { %2302 = vmatpush1.bf16.msra.mxu1 %v2939_v34 }
  0x57   :  { %2320 = vmatprep.subr.bf16.mxu1 %v2870_v12 }
 0x10f   :  { %v169_v47 = vpop.f32.mrb[0].mxu0 }
 0x110   :  { %v171_v49 = vpop.f32.mrb[1].mxu0  ;;  %v170_v33 = vadd.f32 %v169_v47, %v99_v48 }
 0x111   :  { %v173_v51 = vpop.f32.mrb[2].mxu0  ;;  %v172_v39 = vadd.f32 %v171_v49, %v103_v50 }
 0x112   :  { %v174_v52 = vadd.f32 %v173_v51, %v99_v48  ;;  %v175_v53 = vpop.f32.mrb[3].mxu0 }
 0x113   :  { %v176_v54 = vadd.f32 %v175_v53, %v103_v50  ;;  %v241_v53 = vld [vmem:[%s3514_s6] sm:$0xff] }
 0x117   :  { %v179_v55 = vpop.f32.mrb[4].mxu0 }
 0x118   :  { %v180_v56 = vadd.f32 %v179_v55, %v99_v48  ;;  %v181_v57 = vpop.f32.mrb[5].mxu0 }
 0x119   :  { %v182_v58 = vadd.f32 %v181_v57, %v103_v50  ;;  %v183_v59 = vpop.f32.mrb[6].mxu0 }
 0x11a   :  { %v184_v60 = vadd.f32 %v183_v59, %v99_v48  ;;  %v185_v61 = vpop.f32.mrb[7].mxu0 }
 0x11b   :  { %v186_v62 = vadd.f32 %v185_v61, %v103_v50 }
 0x11c   :  { %v324_v2 = vpop.f32.mrb[0].mxu1 }
 0x11d   :  { %v326_v4 = vpop.f32.mrb[1].mxu1 }
 0x11f   :  { %v189_v5 = vpop.f32.mrb[8].mxu0 }
 0x120   :  { %v190_v6 = vadd.f32 %v189_v5, %v99_v48  ;;  %v191_v7 = vpop.f32.mrb[9].mxu0 }
 0x121   :  { %v192_v8 = vadd.f32 %v191_v7, %v103_v50  ;;  %v193_v9 = vpop.f32.mrb[10].mxu0 }
 0x122   :  { %v194_v10 = vadd.f32 %v193_v9, %v99_v48  ;;  %v195_v11 = vpop.f32.mrb[11].mxu0  ;;  %v3001_v14 = vsel %vm79_vm3, %v184_v60, %v190_v6  ;;  %v3005_v15 = vsel %vm79_vm3, %v190_v6, %v184_v60 }
 0x123   :  { %v196_v16 = vadd.f32 %v195_v11, %v103_v50  ;;  %v3009_v17 = vsel %vm80_vm4, %v186_v62, %v192_v8  ;;  %v3013_v19 = vsel %vm80_vm4, %v192_v8, %v186_v62 }
 0x124   :  { %v3017_v20 = vsel %vm79_vm3, %v180_v56, %v194_v10  ;;  %v3021_v22 = vsel %vm79_vm3, %v194_v10, %v180_v56 }
 0x125   :  { %v3025_v24 = vsel %vm80_vm4, %v182_v58, %v196_v16  ;;  %v3029_v25 = vsel %vm80_vm4, %v196_v16, %v182_v58 }
 0x127   :  { %v199_v26 = vpop.f32.mrb[12].mxu0 }
 0x128   :  { %v200_v27 = vadd.f32 %v199_v26, %v99_v48  ;;  %v201_v28 = vpop.f32.mrb[13].mxu0 }
 0x129   :  { %v202_v29 = vadd.f32 %v201_v28, %v103_v50  ;;  %v203_v31 = vpop.f32.mrb[14].mxu0 }
 0x12a   :  { %v204_v35 = vadd.f32 %v203_v31, %v99_v48  ;;  %v205_v36 = vpop.f32.mrb[15].mxu0  ;;  %v374_v37 = vsel %vm79_vm3, %v174_v52, %v200_v27  ;;  %v3035_v38 = vsel %vm79_vm3, %v200_v27, %v174_v52 }
 0x12b   :  { %v206_v40 = vadd.f32 %v205_v36, %v103_v50  ;;  %v375_v41 = vsel %vm80_vm4, %v176_v54, %v202_v29  ;;  %v3041_v42 = vsel %vm80_vm4, %v202_v29, %v176_v54 }
 0x12c   :  { %v252_v45 = vsel %vm79_vm3, %v170_v33, %v204_v35  ;;  %v3047_v47 = vsel %vm79_vm3, %v204_v35, %v170_v33 }
 0x12d   :  { %v325_v48 = vadd.f32 %v324_v2, %v252_v45  ;;  %v253_v51 = vsel %vm80_vm4, %v172_v39, %v206_v40  ;;  %v3053_v49 = vsel %vm80_vm4, %v206_v40, %v172_v39 }
 0x12e   :  { %v327_v50 = vadd.f32 %v326_v4, %v253_v51 }
 0x12f   :  { %v329_v54 = vmul.f32 0.5, %v325_v48 }
 0x130   :  { %2545 = vtanh.f32 %v327_v50  ;;  %v330_v5 = vmul.f32 0.5, %v327_v50 }
 0x131   :  { %2547 = vtanh.f32 %v329_v54 }
 0x13a   :  { %v2546_v52 = vpop.eup %2545 }
 0x13b   :  { %344 = vrot.lane.b32.xlu0 %v2546_v52, %s2748_s1  ;;  %v2548_v55 = vpop.eup %2547 }
 0x13c   :  { %v333_v56 = vmul.f32 0.5, %v2548_v55 }
 0x13e   :  { %v335_v57 = vadd.f32 0.5, %v333_v56 }
 0x13f   :  { %339 = vrot.lane.b32.xlu0 %v241_v53, %s2748_s1 }
 0x1ad   :  { %v345_v58 = vpop.permute.xlu0 %344 }
 0x1ae   :  { %v347_v59 = vmul.f32 %v345_v58, %v335_v57 }
 0x1b0   :  { %349 = vrot.lane.b32.xlu1 %v347_v59, %s2748_s1 }
 0x1b1   :  { %v340_v60 = vpop.permute.xlu0 %339 }
 0x1b2   :  { %v342_v61 = vmul.f32 %v340_v60, %v335_v57 }
 0x222   :  { %v350_v62 = vpop.permute.xlu1 %349 }
 0x223   :  { %v352_v2 = vadd.f32 %v350_v62, %v342_v61 }
 0x225   :  { %2549 = vtanh.f32 %v352_v2 }
 0x226   :  { %2551 = vtanh.f32 %v330_v5 }
 0x22f   :  { %v2550_v4 = vpop.eup %2549 }
 0x230   :  { %355 = vrot.lane.b32.xlu1 %v2550_v4, %s2748_s1  ;;  %v2552_v6 = vpop.eup %2551 }
 0x231   :  { %v334_v7 = vmul.f32 0.5, %v2552_v6 }
 0x233   :  { %v336_v8 = vadd.f32 0.5, %v334_v7 }
 0x2a2   :  { %v356_v9 = vpop.permute.xlu1 %355 }
 0x2a3   :  { %v358_v10 = vmul.f32 %v356_v9, %v336_v8 }
 0x2a5   :  { %360 = vst.msk [vmem:[#allocation2] sm:$0xff] %vm359_vm5, %v358_v10  ;;  %2230 = vmatmul.mubr.msk.f32.vlgmr.msra.gmra.mrb[2].mxu1 %vm254_vm2, %v358_v10 }
 0x2a6   :  { %363 = vst.msk [vmem:[#allocation2 + $0x38] sm:$0xff] %vm362_vm6, %v358_v10  ;;  %2322 = vmatpush1.bf16.msra.mxu1 %v2872_v13  ;;  %675 = vmatprep.mubr.f32.mxu1 %v2747_v1 }
 0x2a7   :  { %2324 = vmatprep.subr.bf16.mxu1 %v2887_v18 }
 0x2aa   :  { %2326 = vmatpush1.bf16.msra.mxu1 %v2897_v21 }
 0x2ab   :  { %2328 = vmatprep.subr.bf16.mxu1 %v2904_v23 }
 0x2ae   :  { %2330 = vmatpush1.bf16.msra.mxu1 %v2928_v30 }
 0x2af   :  { %2332 = vmatprep.subr.bf16.mxu1 %v2931_v32 }
 0x2b2   :  { %2334 = vmatpush1.bf16.msra.mxu1 %v2939_v34 }
 0x2b3   :  { %2352 = vmatprep.subr.bf16.mxu1 %v2870_v12 }
 0x378   :  { %v445_v11 = vpop.f32.mrb[2].mxu1 }
 0x379   :  { %v446_v16 = vadd.f32 %v445_v11, %v374_v37  ;;  %v447_v26 = vpop.f32.mrb[3].mxu1 }
 0x37a   :  { %v448_v27 = vadd.f32 %v447_v26, %v375_v41 }
 0x37b   :  { %v450_v29 = vmul.f32 0.5, %v446_v16 }
 0x37c   :  { %2553 = vtanh.f32 %v448_v27  ;;  %v451_v41 = vmul.f32 0.5, %v448_v27 }
 0x37d   :  { %2555 = vtanh.f32 %v450_v29 }
 0x386   :  { %v2554_v28 = vpop.eup %2553 }
 0x387   :  { %461 = vrot.lane.b32.xlu0 %v2554_v28, %s2748_s1  ;;  %v2556_v31 = vpop.eup %2555 }
 0x388   :  { %v454_v33 = vmul.f32 0.5, %v2556_v31 }
 0x38a   :  { %v456_v35 = vadd.f32 0.5, %v454_v33 }
 0x38c   :  { %v459_v40 = vmul.f32 %v456_v35, %v352_v2 }
 0x3f9   :  { %v462_v36 = vpop.permute.xlu0 %461 }
 0x3fa   :  { %v464_v39 = vmul.f32 %v462_v36, %v456_v35 }
 0x3fc   :  { %466 = vrot.lane.b32.xlu1 %v464_v39, %s2748_s1 }
 0x46e   :  { %v467_v45 = vpop.permute.xlu1 %466 }
 0x46f   :  { %v469_v48 = vadd.f32 %v467_v45, %v459_v40 }
 0x471   :  { %2557 = vtanh.f32 %v469_v48 }
 0x472   :  { %2559 = vtanh.f32 %v451_v41 }
 0x47b   :  { %v2558_v37 = vpop.eup %2557 }
 0x47c   :  { %472 = vrot.lane.b32.xlu0 %v2558_v37, %s2748_s1  ;;  %v2560_v51 = vpop.eup %2559 }
 0x47d   :  { %v455_v50 = vmul.f32 0.5, %v2560_v51 }
 0x47f   :  { %v457_v52 = vadd.f32 0.5, %v455_v50 }
 0x4ee   :  { %v473_v53 = vpop.permute.xlu0 %472 }
 0x4ef   :  { %v475_v54 = vmul.f32 %v473_v53, %v457_v52 }
 0x4f1   :  { %477 = vst.msk [vmem:[#allocation2 + $0x8] sm:$0xff] %vm359_vm5, %v475_v54  ;;  %2231 = vmatmul.mubr.msk.f32.vlgmr.msra.gmra.mrb[16].mxu0 %vm254_vm2, %v475_v54 }
 0x4f2   :  { %479 = vst.msk [vmem:[#allocation2 + $0x30] sm:$0xff] %vm362_vm6, %v475_v54  ;;  %2338 = vmatpush1.bf16.msra.mxu0 %v2872_v13  ;;  %785 = vmatprep.mubr.f32.mxu0 %v2747_v1 }
 0x4f3   :  { %2340 = vmatprep.subr.bf16.mxu0 %v2887_v18 }
 0x4f6   :  { %2342 = vmatpush1.bf16.msra.mxu0 %v2897_v21 }
 0x4f7   :  { %2344 = vmatprep.subr.bf16.mxu0 %v2904_v23 }
 0x4fa   :  { %2346 = vmatpush1.bf16.msra.mxu0 %v2928_v30 }
 0x4fb   :  { %2348 = vmatprep.subr.bf16.mxu0 %v2931_v32 }
 0x4fe   :  { %2350 = vmatpush1.bf16.msra.mxu0 %v2939_v34 }
 0x4ff   :  { %2368 = vmatprep.subr.bf16.mxu0 %v2870_v12 }
 0x5c4   :  { %v561_v55 = vpop.f32.mrb[16].mxu0 }
 0x5c5   :  { %v562_v56 = vadd.f32 %v561_v55, %v3017_v20  ;;  %v563_v57 = vpop.f32.mrb[17].mxu0 }
 0x5c6   :  { %v564_v58 = vadd.f32 %v563_v57, %v3025_v24 }
 0x5c7   :  { %v566_v60 = vmul.f32 0.5, %v562_v56 }
 0x5c8   :  { %2561 = vtanh.f32 %v564_v58  ;;  %v567_v24 = vmul.f32 0.5, %v564_v58 }
 0x5c9   :  { %2563 = vtanh.f32 %v566_v60 }
 0x5d2   :  { %v2562_v59 = vpop.eup %2561 }
 0x5d3   :  { %577 = vrot.lane.b32.xlu1 %v2562_v59, %s2748_s1  ;;  %v2564_v61 = vpop.eup %2563 }
 0x5d4   :  { %v570_v62 = vmul.f32 0.5, %v2564_v61 }
 0x5d6   :  { %v572_v2 = vadd.f32 0.5, %v570_v62 }
 0x5d8   :  { %v575_v6 = vmul.f32 %v572_v2, %v469_v48 }
 0x645   :  { %v578_v4 = vpop.permute.xlu1 %577 }
 0x646   :  { %v580_v5 = vmul.f32 %v578_v4, %v572_v2 }
 0x648   :  { %582 = vrot.lane.b32.xlu0 %v580_v5, %s2748_s1 }
 0x6ba   :  { %v583_v7 = vpop.permute.xlu0 %582 }
 0x6bb   :  { %v585_v8 = vadd.f32 %v583_v7, %v575_v6 }
 0x6bd   :  { %2565 = vtanh.f32 %v585_v8 }
 0x6be   :  { %2567 = vtanh.f32 %v567_v24 }
 0x6c7   :  { %v2566_v20 = vpop.eup %2565 }
 0x6c8   :  { %588 = vrot.lane.b32.xlu1 %v2566_v20, %s2748_s1  ;;  %v2568_v9 = vpop.eup %2567 }
 0x6c9   :  { %v571_v10 = vmul.f32 0.5, %v2568_v9 }
 0x6cb   :  { %v573_v11 = vadd.f32 0.5, %v571_v10 }
 0x73a   :  { %v589_v16 = vpop.permute.xlu1 %588 }
 0x73b   :  { %v591_v26 = vmul.f32 %v589_v16, %v573_v11 }
 0x73d   :  { %593 = vst.msk [vmem:[#allocation2 + $0x10] sm:$0xff] %vm359_vm5, %v591_v26  ;;  %2232 = vmatmul.mubr.msk.f32.vlgmr.msra.gmra.mrb[4].mxu1 %vm254_vm2, %v591_v26 }
 0x73e   :  { %595 = vst.msk [vmem:[#allocation2 + $0x28] sm:$0xff] %vm362_vm6, %v591_v26  ;;  %2354 = vmatpush1.bf16.msra.mxu1 %v2872_v13  ;;  %893 = vmatprep.mubr.f32.mxu1 %v2747_v1 }
 0x73f   :  { %2356 = vmatprep.subr.bf16.mxu1 %v2887_v18 }
 0x742   :  { %2358 = vmatpush1.bf16.msra.mxu1 %v2897_v21 }
 0x743   :  { %2360 = vmatprep.subr.bf16.mxu1 %v2904_v23 }
 0x746   :  { %2362 = vmatpush1.bf16.msra.mxu1 %v2928_v30 }
 0x747   :  { %2364 = vmatprep.subr.bf16.mxu1 %v2931_v32 }
 0x74a   :  { %2366 = vmatpush1.bf16.msra.mxu1 %v2939_v34 }
 0x74b   :  { %2384 = vmatprep.subr.bf16.mxu1 %v2870_v12 }
 0x810   :  { %v677_v27 = vpop.f32.mrb[4].mxu1 }
 0x811   :  { %v678_v28 = vadd.f32 %v677_v27, %v3001_v14  ;;  %v679_v29 = vpop.f32.mrb[5].mxu1 }
 0x812   :  { %v680_v31 = vadd.f32 %v679_v29, %v3009_v17 }
 0x813   :  { %v682_v35 = vmul.f32 0.5, %v678_v28 }
 0x814   :  { %2569 = vtanh.f32 %v680_v31  ;;  %v683_v17 = vmul.f32 0.5, %v680_v31 }
 0x815   :  { %2571 = vtanh.f32 %v682_v35 }
 0x81e   :  { %v2570_v33 = vpop.eup %2569 }
 0x81f   :  { %693 = vrot.lane.b32.xlu0 %v2570_v33, %s2748_s1  ;;  %v2572_v36 = vpop.eup %2571 }
 0x820   :  { %v686_v39 = vmul.f32 0.5, %v2572_v36 }
 0x822   :  { %v688_v40 = vadd.f32 0.5, %v686_v39 }
 0x824   :  { %v691_v12 = vmul.f32 %v688_v40, %v585_v8 }
 0x891   :  { %v694_v45 = vpop.permute.xlu0 %693 }
 0x892   :  { %v696_v48 = vmul.f32 %v694_v45, %v688_v40 }
 0x894   :  { %698 = vrot.lane.b32.xlu1 %v696_v48, %s2748_s1 }
 0x906   :  { %v699_v37 = vpop.permute.xlu1 %698 }
 0x907   :  { %v701_v41 = vadd.f32 %v699_v37, %v691_v12 }
 0x909   :  { %2573 = vtanh.f32 %v701_v41 }
 0x90a   :  { %2575 = vtanh.f32 %v683_v17 }
 0x913   :  { %v2574_v14 = vpop.eup %2573 }
 0x914   :  { %704 = vrot.lane.b32.xlu0 %v2574_v14, %s2748_s1  ;;  %v2576_v51 = vpop.eup %2575 }
 0x915   :  { %v687_v50 = vmul.f32 0.5, %v2576_v51 }
 0x917   :  { %v689_v52 = vadd.f32 0.5, %v687_v50 }
 0x986   :  { %v705_v53 = vpop.permute.xlu0 %704 }
 0x987   :  { %v707_v54 = vmul.f32 %v705_v53, %v689_v52 }
 0x989   :  { %709 = vst.msk [vmem:[#allocation2 + $0x18] sm:$0xff] %vm359_vm5, %v707_v54  ;;  %2233 = vmatmul.mubr.msk.f32.vlgmr.msra.gmra.mrb[18].mxu0 %vm254_vm2, %v707_v54 }
 0x98a   :  { %711 = vst.msk [vmem:[#allocation2 + $0x20] sm:$0xff] %vm362_vm6, %v707_v54  ;;  %2370 = vmatpush1.bf16.msra.mxu0 %v2872_v13  ;;  %1001 = vmatprep.mubr.f32.mxu0 %v2747_v1 }
 0x98b   :  { %2372 = vmatprep.subr.bf16.mxu0 %v2887_v18 }
 0x98e   :  { %2374 = vmatpush1.bf16.msra.mxu0 %v2897_v21 }
 0x98f   :  { %2376 = vmatprep.subr.bf16.mxu0 %v2904_v23 }
 0x992   :  { %2378 = vmatpush1.bf16.msra.mxu0 %v2928_v30 }
 0x993   :  { %2380 = vmatprep.subr.bf16.mxu0 %v2931_v32 }
 0x996   :  { %2382 = vmatpush1.bf16.msra.mxu0 %v2939_v34 }
 0xa5c   :  { %v787_v55 = vpop.f32.mrb[18].mxu0 }
 0xa5d   :  { %v788_v56 = vadd.f32 %v787_v55, %v3005_v15  ;;  %v789_v57 = vpop.f32.mrb[19].mxu0 }
 0xa5e   :  { %v790_v58 = vadd.f32 %v789_v57, %v3013_v19 }
 0xa5f   :  { %v792_v60 = vmul.f32 0.5, %v788_v56 }
 0xa60   :  { %2577 = vtanh.f32 %v790_v58  ;;  %v793_v19 = vmul.f32 0.5, %v790_v58 }
 0xa61   :  { %2579 = vtanh.f32 %v792_v60 }
 0xa6a   :  { %v2578_v59 = vpop.eup %2577 }
 0xa6b   :  { %803 = vrot.lane.b32.xlu1 %v2578_v59, %s2748_s1  ;;  %v2580_v61 = vpop.eup %2579 }
 0xa6c   :  { %v796_v62 = vmul.f32 0.5, %v2580_v61 }
 0xa6e   :  { %v798_v2 = vadd.f32 0.5, %v796_v62 }
 0xa70   :  { %v801_v6 = vmul.f32 %v798_v2, %v701_v41 }
 0xadd   :  { %v804_v4 = vpop.permute.xlu1 %803 }
 0xade   :  { %v806_v5 = vmul.f32 %v804_v4, %v798_v2 }
 0xae0   :  { %808 = vrot.lane.b32.xlu0 %v806_v5, %s2748_s1 }
 0xb52   :  { %v809_v7 = vpop.permute.xlu0 %808 }
 0xb53   :  { %v811_v8 = vadd.f32 %v809_v7, %v801_v6 }
 0xb55   :  { %2581 = vtanh.f32 %v811_v8 }
 0xb56   :  { %2583 = vtanh.f32 %v793_v19 }
 0xb5f   :  { %v2582_v15 = vpop.eup %2581 }
 0xb60   :  { %814 = vrot.lane.b32.xlu1 %v2582_v15, %s2748_s1  ;;  %v2584_v20 = vpop.eup %2583 }
 0xb61   :  { %v797_v24 = vmul.f32 0.5, %v2584_v20 }
 0xb63   :  { %v799_v9 = vadd.f32 0.5, %v797_v24 }
 0xbd2   :  { %v815_v10 = vpop.permute.xlu1 %814 }
 0xbd3   :  { %v817_v11 = vmul.f32 %v815_v10, %v799_v9 }
 0xbd5   :  { %818 = vst.msk [vmem:[#allocation2 + $0x20] sm:$0xff] %vm359_vm5, %v817_v11  ;;  %2234 = vmatmul.mubr.msk.f32.vlgmr.msra.gmra.mrb[6].mxu1 %vm254_vm2, %v817_v11 }
 0xbd6   :  { %819 = vst.msk [vmem:[#allocation2 + $0x18] sm:$0xff] %vm362_vm6, %v817_v11  ;;  %2386 = vmatpush1.bf16.msra.mxu1 %v2872_v13  ;;  %1109 = vmatprep.mubr.f32.mxu1 %v2747_v1  ;;  %v2538_v11 = vld [vmem:[%s3515_s7 + $0x14] ss:$8 sps:$4 sm:$0xff]  }
 0xbd7   :  { %2388 = vmatprep.subr.bf16.mxu1 %v2887_v18 }
 0xbda   :  { %2390 = vmatpush1.bf16.msra.mxu1 %v2897_v21 }
 0xbdb   :  { %2392 = vmatprep.subr.bf16.mxu1 %v2904_v23 }
 0xbde   :  { %2394 = vmatpush1.bf16.msra.mxu1 %v2928_v30 }
 0xbdf   :  { %2396 = vmatprep.subr.bf16.mxu1 %v2931_v32 }
 0xbe2   :  { %2398 = vmatpush1.bf16.msra.mxu1 %v2939_v34 }
 0xca8   :  { %v895_v16 = vpop.f32.mrb[6].mxu1 }
 0xca9   :  { %v896_v26 = vadd.f32 %v895_v16, %v3021_v22  ;;  %v897_v27 = vpop.f32.mrb[7].mxu1 }
 0xcaa   :  { %v898_v13 = vadd.f32 %v897_v27, %v3029_v25 }
 0xcab   :  { %v900_v18 = vmul.f32 0.5, %v896_v26  ;;  %v2536_v26 = vld [vmem:[%s3515_s7 + $0x10] ss:$8 sps:$4 sm:$0xff]  }
 0xcac   :  { %2585 = vtanh.f32 %v898_v13  ;;  %v901_v25 = vmul.f32 0.5, %v898_v13  ;;  %v2539_v13 = vld [vmem:[%s3515_s7 + $0x20] ss:$8 sps:$4 sm:$0xff]  }
 0xcad   :  { %2587 = vtanh.f32 %v900_v18  ;;  %v2544_v18 = vld [vmem:[%s3515_s7 + $0x34] ss:$8 sps:$4 sm:$0xff]  }
 0xcb6   :  { %v2586_v28 = vpop.eup %2585 }
 0xcb7   :  { %911 = vrot.lane.b32.xlu0 %v2586_v28, %s2748_s1  ;;  %v2588_v21 = vpop.eup %2587  ;;  %v2541_v28 = vld [vmem:[%s3515_s7 + $0x24] ss:$8 sps:$4 sm:$0xff]  }
 0xcb8   :  { %v904_v23 = vmul.f32 0.5, %v2588_v21  ;;  %v2542_v21 = vld [vmem:[%s3515_s7 + $0x30] ss:$8 sps:$4 sm:$0xff]  }
 0xcba   :  { %v906_v29 = vadd.f32 0.5, %v904_v23 }
 0xcbc   :  { %v909_v32 = vmul.f32 %v906_v29, %v811_v8 }
 0xd29   :  { %v912_v30 = vpop.permute.xlu0 %911 }
 0xd2a   :  { %v914_v31 = vmul.f32 %v912_v30, %v906_v29  ;;  %v1318_v29 = vld [vmem:[%s3516_s8 + $0x8] sm:$0xff]  ;;  %v1320_v30 = vld [vmem:[%s3516_s8 + $0x18] sm:$0xff] }
 0xd2c   :  { %916 = vrot.lane.b32.xlu1 %v914_v31, %s2748_s1  ;;  %v1317_v31 = vld [vmem:[%s3516_s8] sm:$0xff] }
 0xd9e   :  { %v917_v34 = vpop.permute.xlu1 %916 }
 0xd9f   :  { %v919_v33 = vadd.f32 %v917_v34, %v909_v32  ;;  %v3197_v32 = vpack.c.bf16 %v1320_v30, %v1318_v29  ;;  %v1319_v34 = vld [vmem:[%s3516_s8 + $0x10] sm:$0xff] }
 0xda1   :  { %2589 = vtanh.f32 %v919_v33  ;;  %2400 = vmatprep.subr.bf16.mxu1 %v3197_v32 }
 0xda2   :  { %2591 = vtanh.f32 %v901_v25  ;;  %v1324_v25 = vld [vmem:[%s3516_s8 + $0x38] sm:$0xff] }
 0xdab   :  { %v2590_v22 = vpop.eup %2589 }
 0xdac   :  { %922 = vrot.lane.b32.xlu0 %v2590_v22, %s2748_s1  ;;  %v2592_v35 = vpop.eup %2591  ;;  %v1322_v22 = vld [vmem:[%s3516_s8 + $0x28] sm:$0xff] }
 0xdad   :  { %v905_v36 = vmul.f32 0.5, %v2592_v35  ;;  %v3213_v35 = vpack.c.bf16 %v1324_v25, %v1322_v22 }
 0xdaf   :  { %v907_v39 = vadd.f32 0.5, %v905_v36  ;;  %v1321_v36 = vld [vmem:[%s3516_s8 + $0x20] sm:$0xff] }
 0xe1e   :  { %v923_v40 = vpop.permute.xlu0 %922 }
 0xe1f   :  { %v925_v45 = vmul.f32 %v923_v40, %v907_v39  ;;  %v1323_v39 = vld [vmem:[%s3516_s8 + $0x30] sm:$0xff] }
 0xe20   :  { %v3221_v40 = vpack.c.bf16 %v1323_v39, %v1321_v36 }
 0xe21   :  { %926 = vst.msk [vmem:[#allocation2 + $0x28] sm:$0xff] %vm359_vm5, %v925_v45  ;;  %2235 = vmatmul.mubr.msk.f32.vlgmr.msra.gmra.mrb[20].mxu0 %vm254_vm2, %v925_v45 }
 0xe22   :  { %927 = vst.msk [vmem:[#allocation2 + $0x10] sm:$0xff] %vm362_vm6, %v925_v45  ;;  %1260 = vmatprep.mubr.bf16.mxu0 %v2746_v0  ;;  %v1326_v45 = vld [vmem:[%s3516_s8 + $0x48] sm:$0xff] }
 0xef4   :  { %v1003_v48 = vpop.f32.mrb[20].mxu0 }
 0xef5   :  { %v1004_v12 = vadd.f32 %v1003_v48, %v3035_v38  ;;  %v1005_v37 = vpop.f32.mrb[21].mxu0  ;;  %v1328_v48 = vld [vmem:[%s3516_s8 + $0x58] sm:$0xff] }
 0xef6   :  { %v1006_v41 = vadd.f32 %v1005_v37, %v3041_v42  ;;  %v3234_v37 = vpack.c.bf16 %v1328_v48, %v1326_v45 }
 0xef7   :  { %v1008_v17 = vmul.f32 0.5, %v1004_v12  ;;  %v1325_v12 = vld [vmem:[%s3516_s8 + $0x40] sm:$0xff] }
 0xef8   :  { %2593 = vtanh.f32 %v1006_v41  ;;  %v1009_v42 = vmul.f32 0.5, %v1006_v41  ;;  %v1327_v41 = vld [vmem:[%s3516_s8 + $0x50] sm:$0xff] }
 0xef9   :  { %2595 = vtanh.f32 %v1008_v17  ;;  %v1330_v17 = vld [vmem:[%s3516_s8 + $0x68] sm:$0xff] }
 0xf02   :  { %v2594_v14 = vpop.eup %2593 }
 0xf03   :  { %1019 = vrot.lane.b32.xlu1 %v2594_v14, %s2748_s1  ;;  %v2596_v51 = vpop.eup %2595  ;;  %v3239_v14 = vpack.c.bf16 %v1327_v41, %v1325_v12 }
 0xf04   :  { %v1012_v50 = vmul.f32 0.5, %v2596_v51  ;;  %v1332_v51 = vld [vmem:[%s3516_s8 + $0x78] sm:$0xff] }
 0xf06   :  { %v1014_v52 = vadd.f32 0.5, %v1012_v50  ;;  %v3249_v50 = vpack.c.bf16 %v1332_v51, %v1330_v17 }
 0xf08   :  { %v1017_v55 = vmul.f32 %v1014_v52, %v919_v33  ;;  %v3202_v33 = vpack.c.bf16 %v1319_v34, %v1317_v31 }
 0xf75   :  { %v1020_v53 = vpop.permute.xlu1 %1019 }
 0xf76   :  { %v1022_v54 = vmul.f32 %v1020_v53, %v1014_v52  ;;  %v1329_v52 = vld [vmem:[%s3516_s8 + $0x60] sm:$0xff]  ;;  %v1331_v53 = vld [vmem:[%s3516_s8 + $0x70] sm:$0xff] }
 0xf78   :  { %1024 = vrot.lane.b32.xlu0 %v1022_v54, %s2748_s1  ;;  %v3257_v54 = vpack.c.bf16 %v1331_v53, %v1329_v52 }
 0xfea   :  { %v1025_v56 = vpop.permute.xlu0 %1024 }
 0xfeb   :  { %v1027_v57 = vadd.f32 %v1025_v56, %v1017_v55  ;;  %v1334_v55 = vld [vmem:[%s3519_s11] sm:$0xff] }
 0xfec   :  { %v1333_v56 = vld [vmem:[%s3518_s10] sm:$0xff] }
 0xfed   :  { %2597 = vtanh.f32 %v1027_v57 }
 0xfee   :  { %2599 = vtanh.f32 %v1009_v42 }
 0xff7   :  { %v2598_v38 = vpop.eup %2597 }
 0xff8   :  { %1030 = vrot.lane.b32.xlu1 %v2598_v38, %s2748_s1  ;;  %v2600_v58 = vpop.eup %2599 }
 0xff9   :  { %v1013_v59 = vmul.f32 0.5, %v2600_v58 }
 0xffb   :  { %v1015_v60 = vadd.f32 0.5, %v1013_v59 }
0x106a   :  { %v1031_v61 = vpop.permute.xlu1 %1030 }
0x106b   :  { %v1033_v62 = vmul.f32 %v1031_v61, %v1015_v60 }
0x106d   :  { %1034 = vst.msk [vmem:[#allocation2 + $0x30] sm:$0xff] %vm359_vm5, %v1033_v62  ;;  %2236 = vmatmul.mubr.msk.f32.vlgmr.msra.gmra.mrb[8].mxu1 %vm254_vm2, %v1033_v62 }
0x106e   :  { %1035 = vst.msk [vmem:[#allocation2 + $0x8] sm:$0xff] %vm362_vm6, %v1033_v62  ;;  %1408 = vmatprep.mubr.f32.mxu1 %v2747_v1  ;;  %2402 = vmatpush1.bf16.msra.mxu1 %v3202_v33 }
0x106f   :  { %2404 = vmatprep.subr.bf16.mxu1 %v3213_v35 }
0x1072   :  { %2406 = vmatpush1.bf16.msra.mxu1 %v3221_v40 }
0x1073   :  { %2408 = vmatprep.subr.bf16.mxu1 %v3234_v37 }
0x1075   :  { %v1145_v62 = vld [vmem:[#allocation2 + $0x8] sm:$0xff] }
0x1076   :  { %2410 = vmatpush1.bf16.msra.mxu1 %v3239_v14 }
0x1077   :  { %2412 = vmatprep.subr.bf16.mxu1 %v3249_v50 }
0x107a   :  { %2414 = vmatpush1.bf16.msra.mxu1 %v3257_v54 }
0x107b   :  { %2416 = vmatprep.subr.bf16.mxu1 %v3197_v32 }
0x107d   :  { %2249 = vmatmul.mubr.msk.f32.vlgmr.msra.gmra.mrb[10].mxu1 %vm254_vm2, %v1333_v56 }
0x107e   :  { %2418 = vmatpush1.bf16.msra.mxu1 %v3202_v33  ;;  %1521 = vmatprep.mubr.f32.mxu1 %v2747_v1 }
0x107f   :  { %2420 = vmatprep.subr.bf16.mxu1 %v3213_v35 }
0x1082   :  { %2422 = vmatpush1.bf16.msra.mxu1 %v3221_v40 }
0x1083   :  { %2424 = vmatprep.subr.bf16.mxu1 %v3234_v37 }
0x1086   :  { %2426 = vmatpush1.bf16.msra.mxu1 %v3239_v14 }
0x1087   :  { %2428 = vmatprep.subr.bf16.mxu1 %v3249_v50 }
0x108a   :  { %2430 = vmatpush1.bf16.msra.mxu1 %v3257_v54 }
0x108b   :  { %2448 = vmatprep.subr.bf16.mxu1 %v3197_v32 }
0x1140   :  { %v1111_v2 = vpop.f32.mrb[8].mxu1 }
0x1141   :  { %v1112_v4 = vadd.f32 %v1111_v2, %v3047_v47  ;;  %v1113_v5 = vpop.f32.mrb[9].mxu1  ;;  %v2533_v47 = vld [vmem:[%s3515_s7] ss:$8 sps:$4 sm:$0xff]  }
0x1142   :  { %v3158_v6 = vadd.f32 %v1113_v5, %v3053_v49  ;;  %v2535_v49 = vld [vmem:[%s3515_s7 + $0x4] ss:$8 sps:$4 sm:$0xff]   ;;  %v1147_v5 = vld [vmem:[#allocation2 + $0x18] sm:$0xff] }
0x1143   :  { %v1116_v8 = vmul.f32 0.5, %v1112_v4  ;;  %1228 = vmatprep.subr.bf16.mxu0 %v2535_v49  ;;  %v1146_v4 = vld [vmem:[#allocation2 + $0x10] sm:$0xff]  ;;  %v1164_v49 = vld [vmem:[#allocation8] sm:$0x3] }
0x1144   :  { %2601 = vtanh.f32 %v3158_v6  ;;  %1229 = vmatpush1.bf16.msra.mxu0 %v2533_v47 }
0x1145   :  { %2603 = vtanh.f32 %v1116_v8  ;;  %1230 = vmatprep.subr.bf16.mxu0 %v2538_v11  ;;  %v1148_v8 = vld [vmem:[#allocation2 + $0x20] sm:$0xff]  ;;  %v1169_v11 = vrot.slane %v1164_v49, %v98_v44 }
0x1148   :  { %1231 = vmatpush1.bf16.msra.mxu0 %v2536_v26  ;;  %v1173_v26 = vrot.slane %v1164_v49, %v102_v46 }
0x1149   :  { %1232 = vmatprep.subr.bf16.mxu0 %v2541_v28 }
0x114c   :  { %1233 = vmatpush1.bf16.msra.mxu0 %v2539_v13 }
0x114d   :  { %1234 = vmatprep.subr.bf16.mxu0 %v2544_v18 }
0x114e   :  { %v2602_v7 = vpop.eup %2601 }
0x114f   :  { %1127 = vrot.lane.b32.xlu0 %v2602_v7, %s2748_s1  ;;  %v2604_v15 = vpop.eup %2603  ;;  %v1149_v7 = vld [vmem:[#allocation2 + $0x28] sm:$0xff] }
0x1150   :  { %v1120_v19 = vmul.f32 0.5, %v2604_v15  ;;  %1235 = vmatpush1.bf16.msra.mxu0 %v2542_v21  ;;  %v1154_v15 = vpack.c.bf16 %v1149_v7, %v1148_v8 }
0x1151   :  { %2432 = vmatprep.subr.bf16.mxu0 %v3197_v32 }
0x1152   :  { %v1122_v20 = vadd.f32 0.5, %v1120_v19 }
0x1154   :  { %v1125_v10 = vmul.f32 %v1122_v20, %v1027_v57  ;;  %v1117_v57 = vmul.f32 0.5, %v3158_v6  ;;  %v1153_v6 = vpack.c.bf16 %v1147_v5, %v1146_v4 }
0x11c1   :  { %v1128_v24 = vpop.permute.xlu0 %1127 }
0x11c2   :  { %v1130_v9 = vmul.f32 %v1128_v24, %v1122_v20  ;;  %v1150_v20 = vld [vmem:[#allocation2 + $0x30] sm:$0xff] }
0x11c4   :  { %1132 = vrot.lane.b32.xlu1 %v1130_v9, %s2748_s1  ;;  %v1410_v9 = vpop.f32.mrb[10].mxu1 }
0x11c5   :  { %v1412_v47 = vpop.f32.mrb[11].mxu1 }
0x1236   :  { %v1133_v16 = vpop.permute.xlu1 %1132 }
0x1237   :  { %v1135_v27 = vadd.f32 %v1133_v16, %v1125_v10 }
0x1239   :  { %2605 = vtanh.f32 %v1135_v27 }
0x123a   :  { %2607 = vtanh.f32 %v1117_v57 }
0x1243   :  { %v2606_v23 = vpop.eup %2605 }
0x1244   :  { %1138 = vrot.lane.b32.xlu0 %v2606_v23, %s2748_s1  ;;  %v2608_v38 = vpop.eup %2607 }
0x1245   :  { %v1121_v42 = vmul.f32 0.5, %v2608_v38 }
0x1247   :  { %v1123_v58 = vadd.f32 0.5, %v1121_v42 }
0x1248   :  { %1425 = vrot.lane.b32.xlu0 %v1334_v55, %s2748_s1 }
0x12b6   :  { %v1139_v59 = vpop.permute.xlu0 %1138 }
0x12b7   :  { %v1141_v60 = vmul.f32 %v1139_v59, %v1123_v58 }
0x12b9   :  { %1142 = vst.msk [vmem:[#allocation2 + $0x38] sm:$0xff] %vm359_vm5, %v1141_v60 }
0x12ba   :  { %1143 = vst.msk [vmem:[#allocation2] sm:$0xff] %vm362_vm6, %v1141_v60 }
0x12c0   :  { %v1151_v19 = vld [vmem:[#allocation2 + $0x38] sm:$0xff] }
0x12c1   :  { %v1144_v61 = vld [vmem:[#allocation2] sm:$0xff]  ;;  %v1155_v24 = vpack.c.bf16 %v1151_v19, %v1150_v20 }
0x12c2   :  { %v1152_v2 = vpack.c.bf16 %v1145_v62, %v1144_v61 }
0x12c4   :  { %2245 = vmatmul.mubr.msk.bf16.vlgmr.msra.gmra.mrb[24].mxu0 %vm254_vm2, %v1152_v2 }
0x12c5   :  { %1270 = vmatprep.mubr.bf16.mxu0 %v2746_v0  ;;  %2434 = vmatpush1.bf16.msra.mxu0 %v3202_v33 }
0x12c6   :  { %2436 = vmatprep.subr.bf16.mxu0 %v3213_v35 }
0x12c9   :  { %2438 = vmatpush1.bf16.msra.mxu0 %v3221_v40 }
0x12ca   :  { %2440 = vmatprep.subr.bf16.mxu0 %v3234_v37 }
0x12cc   :  { %2246 = vmatmul.mubr.msk.bf16.gmra.mrb[28].mxu0 %vm254_vm2, %v1153_v6 }
0x12cd   :  { %1280 = vmatprep.mubr.bf16.mxu0 %v2746_v0  ;;  %2442 = vmatpush1.bf16.msra.mxu0 %v3239_v14 }
0x12ce   :  { %2444 = vmatprep.subr.bf16.mxu0 %v3249_v50 }
0x12d1   :  { %2446 = vmatpush1.bf16.msra.mxu0 %v3257_v54 }
0x12d2   :  { %2464 = vmatprep.subr.bf16.mxu0 %v3197_v32 }
0x12d4   :  { %2247 = vmatmul.mubr.msk.bf16.gmra.mrb[32].mxu0 %vm254_vm2, %v1154_v15 }
0x12d5   :  { %1290 = vmatprep.mubr.bf16.mxu0 %v2746_v0 }
0x12dc   :  { %2248 = vmatmul.mubr.msk.bf16.gmra.mrb[36].mxu0 %vm254_vm2, %v1155_v24 }
0x12dd   :  { %1631 = vmatprep.mubr.f32.mxu0 %v2747_v1 }
0x1397   :  { %v1262_v10 = vpop.f32.mrb[24].mxu0 }
0x1398   :  { %v1264_v16 = vpop.f32.mrb[25].mxu0  ;;  %v1263_v60 = vadd.f32 %v1262_v10, %v1169_v11 }
0x1399   :  { %v1266_v27 = vpop.f32.mrb[26].mxu0  ;;  %v1265_v5 = vadd.f32 %v1264_v16, %v1173_v26 }
0x139a   :  { %v1267_v0 = vadd.f32 %v1266_v27, %v1169_v11  ;;  %v1268_v13 = vpop.f32.mrb[27].mxu0 }
0x139b   :  { %v1269_v28 = vadd.f32 %v1268_v13, %v1173_v26 }
0x139f   :  { %v1272_v18 = vpop.f32.mrb[28].mxu0 }
0x13a0   :  { %v1273_v21 = vadd.f32 %v1272_v18, %v1169_v11  ;;  %v1274_v23 = vpop.f32.mrb[29].mxu0 }
0x13a1   :  { %v1275_v29 = vadd.f32 %v1274_v23, %v1173_v26  ;;  %v1276_v30 = vpop.f32.mrb[30].mxu0 }
0x13a2   :  { %v1277_v31 = vadd.f32 %v1276_v30, %v1169_v11  ;;  %v1278_v34 = vpop.f32.mrb[31].mxu0 }
0x13a3   :  { %v1279_v22 = vadd.f32 %v1278_v34, %v1173_v26 }
0x13a7   :  { %v1282_v25 = vpop.f32.mrb[32].mxu0 }
0x13a8   :  { %v1283_v36 = vadd.f32 %v1282_v25, %v1169_v11  ;;  %v1284_v39 = vpop.f32.mrb[33].mxu0 }
0x13a9   :  { %v1285_v44 = vadd.f32 %v1284_v39, %v1173_v26  ;;  %v1286_v45 = vpop.f32.mrb[34].mxu0 }
0x13aa   :  { %v1287_v48 = vadd.f32 %v1286_v45, %v1169_v11  ;;  %v1288_v43 = vpop.f32.mrb[35].mxu0  ;;  %v3304_v46 = vsel %vm79_vm3, %v1277_v31, %v1283_v36  ;;  %v3308_v12 = vsel %vm79_vm3, %v1283_v36, %v1277_v31 }
0x13ab   :  { %v1289_v41 = vadd.f32 %v1288_v43, %v1173_v26  ;;  %v3312_v17 = vsel %vm80_vm4, %v1279_v22, %v1285_v44  ;;  %v3316_v51 = vsel %vm80_vm4, %v1285_v44, %v1279_v22 }
0x13ac   :  { %v3320_v52 = vsel %vm79_vm3, %v1273_v21, %v1287_v48  ;;  %v3324_v53 = vsel %vm79_vm3, %v1287_v48, %v1273_v21 }
0x13ad   :  { %v3328_v55 = vsel %vm80_vm4, %v1275_v29, %v1289_v41  ;;  %v3332_v56 = vsel %vm80_vm4, %v1289_v41, %v1275_v29 }
0x13af   :  { %v1292_v57 = vpop.f32.mrb[36].mxu0 }
0x13b0   :  { %v1293_v38 = vadd.f32 %v1292_v57, %v1169_v11  ;;  %v1294_v42 = vpop.f32.mrb[37].mxu0 }
0x13b1   :  { %v1295_v58 = vadd.f32 %v1294_v42, %v1173_v26  ;;  %v1296_v59 = vpop.f32.mrb[38].mxu0 }
0x13b2   :  { %v1297_v61 = vadd.f32 %v1296_v59, %v1169_v11  ;;  %v1298_v62 = vpop.f32.mrb[39].mxu0  ;;  %v1452_v2 = vsel %vm79_vm3, %v1267_v0, %v1293_v38  ;;  %v3338_v4 = vsel %vm79_vm3, %v1293_v38, %v1267_v0 }
0x13b3   :  { %v1299_v6 = vadd.f32 %v1298_v62, %v1173_v26  ;;  %v1453_v7 = vsel %vm80_vm4, %v1269_v28, %v1295_v58  ;;  %v3344_v8 = vsel %vm80_vm4, %v1295_v58, %v1269_v28 }
0x13b4   :  { %v1339_v15 = vsel %vm79_vm3, %v1263_v60, %v1297_v61  ;;  %v3350_v19 = vsel %vm79_vm3, %v1297_v61, %v1263_v60 }
0x13b5   :  { %v1411_v20 = vadd.f32 %v1410_v9, %v1339_v15  ;;  %v1340_v24 = vsel %vm80_vm4, %v1265_v5, %v1299_v6  ;;  %v3356_v49 = vsel %vm80_vm4, %v1299_v6, %v1265_v5  ;;  %v1426_v9 = vpop.permute.xlu0 %1425 }
0x13b6   :  { %v1413_v10 = vadd.f32 %v1412_v47, %v1340_v24 }
0x13b7   :  { %v1415_v16 = vmul.f32 0.5, %v1411_v20 }
0x13b8   :  { %2609 = vtanh.f32 %v1413_v10  ;;  %v1416_v47 = vmul.f32 0.5, %v1413_v10 }
0x13b9   :  { %2611 = vtanh.f32 %v1415_v16 }
0x13c2   :  { %v2610_v11 = vpop.eup %2609 }
0x13c3   :  { %1430 = vrot.lane.b32.xlu1 %v2610_v11, %s2748_s1  ;;  %v2612_v26 = vpop.eup %2611 }
0x13c4   :  { %v1419_v27 = vmul.f32 0.5, %v2612_v26 }
0x13c6   :  { %v1421_v63 = vadd.f32 0.5, %v1419_v27 }
0x13c8   :  { %v1428_v28 = vmul.f32 %v1426_v9, %v1421_v63 }
0x1435   :  { %v1431_v0 = vpop.permute.xlu1 %1430 }
0x1436   :  { %v1433_v13 = vmul.f32 %v1431_v0, %v1421_v63 }
0x1438   :  { %1435 = vrot.lane.b32.xlu1 %v1433_v13, %s2748_s1 }
0x14aa   :  { %v1436_v18 = vpop.permute.xlu1 %1435 }
0x14ab   :  { %v1438_v3 = vadd.f32 %v1436_v18, %v1428_v28 }
0x14ad   :  { %2613 = vtanh.f32 %v1438_v3 }
0x14ae   :  { %2615 = vtanh.f32 %v1416_v47 }
0x14b7   :  { %v2614_v21 = vpop.eup %2613 }
0x14b8   :  { %1441 = vrot.lane.b32.xlu0 %v2614_v21, %s2748_s1  ;;  %v2616_v23 = vpop.eup %2615 }
0x14b9   :  { %v1420_v29 = vmul.f32 0.5, %v2616_v23 }
0x14bb   :  { %v1422_v30 = vadd.f32 0.5, %v1420_v29 }
0x152a   :  { %v1442_v31 = vpop.permute.xlu0 %1441 }
0x152b   :  { %v1444_v34 = vmul.f32 %v1442_v31, %v1422_v30 }
0x152d   :  { %1445 = vst.msk [vmem:[%s3520_s12] sm:$0xff] %vm359_vm5, %v1444_v34  ;;  %2251 = vmatmul.mubr.msk.f32.vlgmr.msra.gmra.mrb[12].mxu1 %vm254_vm2, %v1444_v34 }
0x152e   :  { %2250 = vst.msk [vmem:[%s3520_s12 + $0x38] sm:$0xff] %vm362_vm6, %v1444_v34  ;;  %2450 = vmatpush1.bf16.msra.mxu1 %v3202_v33  ;;  %1741 = vmatprep.mubr.f32.mxu1 %v2747_v1 }
0x152f   :  { %2452 = vmatprep.subr.bf16.mxu1 %v3213_v35 }
0x1532   :  { %2454 = vmatpush1.bf16.msra.mxu1 %v3221_v40 }
0x1533   :  { %2456 = vmatprep.subr.bf16.mxu1 %v3234_v37 }
0x1536   :  { %2458 = vmatpush1.bf16.msra.mxu1 %v3239_v14 }
0x1537   :  { %2460 = vmatprep.subr.bf16.mxu1 %v3249_v50 }
0x153a   :  { %2462 = vmatpush1.bf16.msra.mxu1 %v3257_v54 }
0x153b   :  { %2480 = vmatprep.subr.bf16.mxu1 %v3197_v32 }
0x1600   :  { %v1523_v22 = vpop.f32.mrb[12].mxu1 }
0x1601   :  { %v1524_v25 = vadd.f32 %v1523_v22, %v1452_v2  ;;  %v1525_v36 = vpop.f32.mrb[13].mxu1 }
0x1602   :  { %v1526_v39 = vadd.f32 %v1525_v36, %v1453_v7 }
0x1603   :  { %v1528_v45 = vmul.f32 0.5, %v1524_v25 }
0x1604   :  { %2617 = vtanh.f32 %v1526_v39  ;;  %v1529_v61 = vmul.f32 0.5, %v1526_v39 }
0x1605   :  { %2619 = vtanh.f32 %v1528_v45 }
0x160e   :  { %v2618_v44 = vpop.eup %2617 }
0x160f   :  { %1539 = vrot.lane.b32.xlu1 %v2618_v44, %s2748_s1  ;;  %v2620_v48 = vpop.eup %2619 }
0x1610   :  { %v1532_v43 = vmul.f32 0.5, %v2620_v48 }
0x1612   :  { %v1534_v41 = vadd.f32 0.5, %v1532_v43 }
0x1614   :  { %v1537_v42 = vmul.f32 %v1534_v41, %v1438_v3 }
0x1681   :  { %v1540_v57 = vpop.permute.xlu1 %1539 }
0x1682   :  { %v1542_v38 = vmul.f32 %v1540_v57, %v1534_v41 }
0x1684   :  { %1544 = vrot.lane.b32.xlu0 %v1542_v38, %s2748_s1 }
0x16f6   :  { %v1545_v58 = vpop.permute.xlu0 %1544 }
0x16f7   :  { %v1547_v59 = vadd.f32 %v1545_v58, %v1537_v42 }
0x16f9   :  { %2621 = vtanh.f32 %v1547_v59 }
0x16fa   :  { %2623 = vtanh.f32 %v1529_v61 }
0x1703   :  { %v2622_v60 = vpop.eup %2621 }
0x1704   :  { %1550 = vrot.lane.b32.xlu1 %v2622_v60, %s2748_s1  ;;  %v2624_v62 = vpop.eup %2623 }
0x1705   :  { %v1533_v2 = vmul.f32 0.5, %v2624_v62 }
0x1707   :  { %v1535_v5 = vadd.f32 0.5, %v1533_v2 }
0x1776   :  { %v1551_v6 = vpop.permute.xlu1 %1550 }
0x1777   :  { %v1553_v7 = vmul.f32 %v1551_v6, %v1535_v5 }
0x1779   :  { %2252 = vst.msk [vmem:[%s3520_s12 + $0x8] sm:$0xff] %vm359_vm5, %v1553_v7  ;;  %2254 = vmatmul.mubr.msk.f32.vlgmr.msra.gmra.mrb[22].mxu0 %vm254_vm2, %v1553_v7 }
0x177a   :  { %2253 = vst.msk [vmem:[%s3520_s12 + $0x30] sm:$0xff] %vm362_vm6, %v1553_v7  ;;  %2466 = vmatpush1.bf16.msra.mxu0 %v3202_v33  ;;  %1851 = vmatprep.mubr.f32.mxu0 %v2747_v1 }
0x177b   :  { %2468 = vmatprep.subr.bf16.mxu0 %v3213_v35 }
0x177e   :  { %2470 = vmatpush1.bf16.msra.mxu0 %v3221_v40 }
0x177f   :  { %2472 = vmatprep.subr.bf16.mxu0 %v3234_v37 }
0x1782   :  { %2474 = vmatpush1.bf16.msra.mxu0 %v3239_v14 }
0x1783   :  { %2476 = vmatprep.subr.bf16.mxu0 %v3249_v50 }
0x1786   :  { %2478 = vmatpush1.bf16.msra.mxu0 %v3257_v54 }
0x1787   :  { %2496 = vmatprep.subr.bf16.mxu0 %v3197_v32 }
0x184c   :  { %v1633_v15 = vpop.f32.mrb[22].mxu0 }
0x184d   :  { %v1634_v20 = vadd.f32 %v1633_v15, %v3320_v52  ;;  %v1635_v24 = vpop.f32.mrb[23].mxu0 }
0x184e   :  { %v1636_v10 = vadd.f32 %v1635_v24, %v3328_v55 }
0x184f   :  { %v1638_v16 = vmul.f32 0.5, %v1634_v20 }
0x1850   :  { %2625 = vtanh.f32 %v1636_v10  ;;  %v1639_v55 = vmul.f32 0.5, %v1636_v10 }
0x1851   :  { %2627 = vtanh.f32 %v1638_v16 }
0x185a   :  { %v2626_v11 = vpop.eup %2625 }
0x185b   :  { %1649 = vrot.lane.b32.xlu0 %v2626_v11, %s2748_s1  ;;  %v2628_v26 = vpop.eup %2627 }
0x185c   :  { %v1642_v27 = vmul.f32 0.5, %v2628_v26 }
0x185e   :  { %v1644_v63 = vadd.f32 0.5, %v1642_v27 }
0x1860   :  { %v1647_v9 = vmul.f32 %v1644_v63, %v1547_v59 }
0x18cd   :  { %v1650_v0 = vpop.permute.xlu0 %1649 }
0x18ce   :  { %v1652_v13 = vmul.f32 %v1650_v0, %v1644_v63 }
0x18d0   :  { %1654 = vrot.lane.b32.xlu1 %v1652_v13, %s2748_s1 }
0x1942   :  { %v1655_v28 = vpop.permute.xlu1 %1654 }
0x1943   :  { %v1657_v18 = vadd.f32 %v1655_v28, %v1647_v9 }
0x1945   :  { %2629 = vtanh.f32 %v1657_v18 }
0x1946   :  { %2631 = vtanh.f32 %v1639_v55 }
0x194f   :  { %v2630_v52 = vpop.eup %2629 }
0x1950   :  { %1660 = vrot.lane.b32.xlu0 %v2630_v52, %s2748_s1  ;;  %v2632_v3 = vpop.eup %2631 }
0x1951   :  { %v1643_v21 = vmul.f32 0.5, %v2632_v3 }
0x1953   :  { %v1645_v47 = vadd.f32 0.5, %v1643_v21 }
0x19c2   :  { %v1661_v23 = vpop.permute.xlu0 %1660 }
0x19c3   :  { %v1663_v29 = vmul.f32 %v1661_v23, %v1645_v47 }
0x19c5   :  { %2255 = vst.msk [vmem:[%s3520_s12 + $0x10] sm:$0xff] %vm359_vm5, %v1663_v29  ;;  %2257 = vmatmul.mubr.msk.f32.vlgmr.msra.gmra.mrb[14].mxu1 %vm254_vm2, %v1663_v29 }
0x19c6   :  { %2256 = vst.msk [vmem:[%s3520_s12 + $0x28] sm:$0xff] %vm362_vm6, %v1663_v29  ;;  %2482 = vmatpush1.bf16.msra.mxu1 %v3202_v33  ;;  %1959 = vmatprep.mubr.f32.mxu1 %v2747_v1 }
0x19c7   :  { %2484 = vmatprep.subr.bf16.mxu1 %v3213_v35 }
0x19ca   :  { %2486 = vmatpush1.bf16.msra.mxu1 %v3221_v40 }
0x19cb   :  { %2488 = vmatprep.subr.bf16.mxu1 %v3234_v37 }
0x19ce   :  { %2490 = vmatpush1.bf16.msra.mxu1 %v3239_v14 }
0x19cf   :  { %2492 = vmatprep.subr.bf16.mxu1 %v3249_v50 }
0x19d2   :  { %2494 = vmatpush1.bf16.msra.mxu1 %v3257_v54 }
0x19d3   :  { %2512 = vmatprep.subr.bf16.mxu1 %v3197_v32 }
0x1a98   :  { %v1743_v30 = vpop.f32.mrb[14].mxu1 }
0x1a99   :  { %v1744_v31 = vadd.f32 %v1743_v30, %v3304_v46  ;;  %v1745_v34 = vpop.f32.mrb[15].mxu1 }
0x1a9a   :  { %v1746_v22 = vadd.f32 %v1745_v34, %v3312_v17 }
0x1a9b   :  { %v1748_v36 = vmul.f32 0.5, %v1744_v31 }
0x1a9c   :  { %2633 = vtanh.f32 %v1746_v22  ;;  %v1749_v17 = vmul.f32 0.5, %v1746_v22 }
0x1a9d   :  { %2635 = vtanh.f32 %v1748_v36 }
0x1aa6   :  { %v2634_v25 = vpop.eup %2633 }
0x1aa7   :  { %1759 = vrot.lane.b32.xlu1 %v2634_v25, %s2748_s1  ;;  %v2636_v39 = vpop.eup %2635 }
0x1aa8   :  { %v1752_v44 = vmul.f32 0.5, %v2636_v39 }
0x1aaa   :  { %v1754_v45 = vadd.f32 0.5, %v1752_v44 }
0x1aac   :  { %v1757_v32 = vmul.f32 %v1754_v45, %v1657_v18 }
0x1b19   :  { %v1760_v48 = vpop.permute.xlu1 %1759 }
0x1b1a   :  { %v1762_v43 = vmul.f32 %v1760_v48, %v1754_v45 }
0x1b1c   :  { %1764 = vrot.lane.b32.xlu0 %v1762_v43, %s2748_s1 }
0x1b8e   :  { %v1765_v41 = vpop.permute.xlu0 %1764 }
0x1b8f   :  { %v1767_v57 = vadd.f32 %v1765_v41, %v1757_v32 }
0x1b91   :  { %2637 = vtanh.f32 %v1767_v57 }
0x1b92   :  { %2639 = vtanh.f32 %v1749_v17 }
0x1b9b   :  { %v2638_v46 = vpop.eup %2637 }
0x1b9c   :  { %1770 = vrot.lane.b32.xlu1 %v2638_v46, %s2748_s1  ;;  %v2640_v38 = vpop.eup %2639 }
0x1b9d   :  { %v1753_v42 = vmul.f32 0.5, %v2640_v38 }
0x1b9f   :  { %v1755_v58 = vadd.f32 0.5, %v1753_v42 }
0x1c0e   :  { %v1771_v59 = vpop.permute.xlu1 %1770 }
0x1c0f   :  { %v1773_v60 = vmul.f32 %v1771_v59, %v1755_v58 }
0x1c11   :  { %2258 = vst.msk [vmem:[%s3520_s12 + $0x18] sm:$0xff] %vm359_vm5, %v1773_v60  ;;  %2260 = vmatmul.mubr.msk.f32.vlgmr.msra.gmra.mrb[40].mxu0 %vm254_vm2, %v1773_v60 }
0x1c12   :  { %2259 = vst.msk [vmem:[%s3520_s12 + $0x20] sm:$0xff] %vm362_vm6, %v1773_v60  ;;  %2498 = vmatpush1.bf16.msra.mxu0 %v3202_v33  ;;  %2067 = vmatprep.mubr.f32.mxu0 %v2747_v1 }
0x1c13   :  { %2500 = vmatprep.subr.bf16.mxu0 %v3213_v35 }
0x1c16   :  { %2502 = vmatpush1.bf16.msra.mxu0 %v3221_v40 }
0x1c17   :  { %2504 = vmatprep.subr.bf16.mxu0 %v3234_v37 }
0x1c1a   :  { %2506 = vmatpush1.bf16.msra.mxu0 %v3239_v14 }
0x1c1b   :  { %2508 = vmatprep.subr.bf16.mxu0 %v3249_v50 }
0x1c1e   :  { %2510 = vmatpush1.bf16.msra.mxu0 %v3257_v54 }
0x1ce4   :  { %v1853_v61 = vpop.f32.mrb[40].mxu0 }
0x1ce5   :  { %v1854_v62 = vadd.f32 %v1853_v61, %v3308_v12  ;;  %v1855_v2 = vpop.f32.mrb[41].mxu0 }
0x1ce6   :  { %v1856_v5 = vadd.f32 %v1855_v2, %v3316_v51 }
0x1ce7   :  { %v1858_v7 = vmul.f32 0.5, %v1854_v62 }
0x1ce8   :  { %2641 = vtanh.f32 %v1856_v5  ;;  %v1859_v51 = vmul.f32 0.5, %v1856_v5 }
0x1ce9   :  { %2643 = vtanh.f32 %v1858_v7 }
0x1cf2   :  { %v2642_v6 = vpop.eup %2641 }
0x1cf3   :  { %1869 = vrot.lane.b32.xlu0 %v2642_v6, %s2748_s1  ;;  %v2644_v15 = vpop.eup %2643 }
0x1cf4   :  { %v1862_v20 = vmul.f32 0.5, %v2644_v15 }
0x1cf6   :  { %v1864_v24 = vadd.f32 0.5, %v1862_v20 }
0x1cf8   :  { %v1867_v16 = vmul.f32 %v1864_v24, %v1767_v57 }
0x1d65   :  { %v1870_v10 = vpop.permute.xlu0 %1869 }
0x1d66   :  { %v1872_v11 = vmul.f32 %v1870_v10, %v1864_v24 }
0x1d68   :  { %1874 = vrot.lane.b32.xlu1 %v1872_v11, %s2748_s1 }
0x1dda   :  { %v1875_v26 = vpop.permute.xlu1 %1874 }
0x1ddb   :  { %v1877_v27 = vadd.f32 %v1875_v26, %v1867_v16 }
0x1ddd   :  { %2645 = vtanh.f32 %v1877_v27 }
0x1dde   :  { %2647 = vtanh.f32 %v1859_v51 }
0x1de7   :  { %v2646_v12 = vpop.eup %2645 }
0x1de8   :  { %1880 = vrot.lane.b32.xlu0 %v2646_v12, %s2748_s1  ;;  %v2648_v63 = vpop.eup %2647 }
0x1de9   :  { %v1863_v0 = vmul.f32 0.5, %v2648_v63 }
0x1deb   :  { %v1865_v13 = vadd.f32 0.5, %v1863_v0 }
0x1e5a   :  { %v1881_v9 = vpop.permute.xlu0 %1880 }
0x1e5b   :  { %v1883_v28 = vmul.f32 %v1881_v9, %v1865_v13 }
0x1e5d   :  { %2261 = vst.msk [vmem:[%s3520_s12 + $0x20] sm:$0xff] %vm359_vm5, %v1883_v28  ;;  %2263 = vmatmul.mubr.msk.f32.vlgmr.msra.gmra.mrb[16].mxu1 %vm254_vm2, %v1883_v28 }
0x1e5e   :  { %2262 = vst.msk [vmem:[%s3520_s12 + $0x18] sm:$0xff] %vm362_vm6, %v1883_v28  ;;  %2514 = vmatpush1.bf16.msra.mxu1 %v3202_v33  ;;  %2175 = vmatprep.mubr.f32.mxu1 %v2747_v1 }
0x1e5f   :  { %2516 = vmatprep.subr.bf16.mxu1 %v3213_v35 }
0x1e62   :  { %2518 = vmatpush1.bf16.msra.mxu1 %v3221_v40 }
0x1e63   :  { %2520 = vmatprep.subr.bf16.mxu1 %v3234_v37 }
0x1e66   :  { %2522 = vmatpush1.bf16.msra.mxu1 %v3239_v14 }
0x1e67   :  { %2524 = vmatprep.subr.bf16.mxu1 %v3249_v50 }
0x1e6a   :  { %2526 = vmatpush1.bf16.msra.mxu1 %v3257_v54 }
0x1f30   :  { %v1961_v18 = vpop.f32.mrb[16].mxu1 }
0x1f31   :  { %v1962_v52 = vadd.f32 %v1961_v18, %v3324_v53  ;;  %v1963_v55 = vpop.f32.mrb[17].mxu1 }
0x1f32   :  { %v1964_v33 = vadd.f32 %v1963_v55, %v3332_v56 }
0x1f33   :  { %v1966_v35 = vmul.f32 0.5, %v1962_v52 }
0x1f34   :  { %2649 = vtanh.f32 %v1964_v33  ;;  %v1967_v56 = vmul.f32 0.5, %v1964_v33 }
0x1f35   :  { %2651 = vtanh.f32 %v1966_v35 }
0x1f3e   :  { %v2650_v1 = vpop.eup %2649 }
0x1f3f   :  { %1977 = vrot.lane.b32.xlu1 %v2650_v1, %s2748_s1  ;;  %v2652_v40 = vpop.eup %2651 }
0x1f40   :  { %v1970_v37 = vmul.f32 0.5, %v2652_v40 }
0x1f42   :  { %v1972_v3 = vadd.f32 0.5, %v1970_v37 }
0x1f44   :  { %v1975_v50 = vmul.f32 %v1972_v3, %v1877_v27 }
0x1fb1   :  { %v1978_v14 = vpop.permute.xlu1 %1977 }
0x1fb2   :  { %v1980_v21 = vmul.f32 %v1978_v14, %v1972_v3 }
0x1fb4   :  { %1982 = vrot.lane.b32.xlu0 %v1980_v21, %s2748_s1 }
0x2026   :  { %v1983_v54 = vpop.permute.xlu0 %1982 }
0x2027   :  { %v1985_v47 = vadd.f32 %v1983_v54, %v1975_v50 }
0x2029   :  { %2653 = vtanh.f32 %v1985_v47 }
0x202a   :  { %2655 = vtanh.f32 %v1967_v56 }
0x2033   :  { %v2654_v53 = vpop.eup %2653 }
0x2034   :  { %1988 = vrot.lane.b32.xlu1 %v2654_v53, %s2748_s1  ;;  %v2656_v23 = vpop.eup %2655 }
0x2035   :  { %v1971_v29 = vmul.f32 0.5, %v2656_v23 }
0x2037   :  { %v1973_v30 = vadd.f32 0.5, %v1971_v29 }
0x20a6   :  { %v1989_v31 = vpop.permute.xlu1 %1988 }
0x20a7   :  { %v1991_v34 = vmul.f32 %v1989_v31, %v1973_v30 }
0x20a9   :  { %2264 = vst.msk [vmem:[%s3520_s12 + $0x28] sm:$0xff] %vm359_vm5, %v1991_v34  ;;  %2266 = vmatmul.mubr.msk.f32.vlgmr.msra.gmra.mrb[42].mxu0 %vm254_vm2, %v1991_v34 }
0x20aa   :  { %2265 = vst.msk [vmem:[%s3520_s12 + $0x10] sm:$0xff] %vm362_vm6, %v1991_v34 }
0x217c   :  { %v2069_v22 = vpop.f32.mrb[42].mxu0 }
0x217d   :  { %v2070_v25 = vadd.f32 %v2069_v22, %v3338_v4  ;;  %v2071_v36 = vpop.f32.mrb[43].mxu0 }
0x217e   :  { %v2072_v39 = vadd.f32 %v2071_v36, %v3344_v8 }
0x217f   :  { %v2074_v45 = vmul.f32 0.5, %v2070_v25 }
0x2180   :  { %2657 = vtanh.f32 %v2072_v39  ;;  %v2075_v8 = vmul.f32 0.5, %v2072_v39 }
0x2181   :  { %2659 = vtanh.f32 %v2074_v45 }
0x218a   :  { %v2658_v44 = vpop.eup %2657 }
0x218b   :  { %2085 = vrot.lane.b32.xlu0 %v2658_v44, %s2748_s1  ;;  %v2660_v48 = vpop.eup %2659 }
0x218c   :  { %v2078_v43 = vmul.f32 0.5, %v2660_v48 }
0x218e   :  { %v2080_v32 = vadd.f32 0.5, %v2078_v43 }
0x2190   :  { %v2083_v46 = vmul.f32 %v2080_v32, %v1985_v47 }
0x21fd   :  { %v2086_v41 = vpop.permute.xlu0 %2085 }
0x21fe   :  { %v2088_v57 = vmul.f32 %v2086_v41, %v2080_v32 }
0x2200   :  { %2090 = vrot.lane.b32.xlu1 %v2088_v57, %s2748_s1 }
0x2272   :  { %v2091_v17 = vpop.permute.xlu1 %2090 }
0x2273   :  { %v2093_v38 = vadd.f32 %v2091_v17, %v2083_v46 }
0x2275   :  { %2661 = vtanh.f32 %v2093_v38 }
0x2276   :  { %2663 = vtanh.f32 %v2075_v8 }
0x227f   :  { %v2662_v4 = vpop.eup %2661 }
0x2280   :  { %2096 = vrot.lane.b32.xlu0 %v2662_v4, %s2748_s1  ;;  %v2664_v42 = vpop.eup %2663 }
0x2281   :  { %v2079_v58 = vmul.f32 0.5, %v2664_v42 }
0x2283   :  { %v2081_v59 = vadd.f32 0.5, %v2079_v58 }
0x22f2   :  { %v2097_v60 = vpop.permute.xlu0 %2096 }
0x22f3   :  { %v2099_v61 = vmul.f32 %v2097_v60, %v2081_v59 }
0x22f5   :  { %2267 = vst.msk [vmem:[%s3520_s12 + $0x30] sm:$0xff] %vm359_vm5, %v2099_v61  ;;  %2269 = vmatmul.mubr.msk.f32.vlgmr.msra.gmra.mrb[18].mxu1 %vm254_vm2, %v2099_v61 }
0x22f6   :  { %2268 = vst.msk [vmem:[%s3520_s12 + $0x8] sm:$0xff] %vm362_vm6, %v2099_v61 }
0x23c8   :  { %v2177_v62 = vpop.f32.mrb[18].mxu1 }
0x23c9   :  { %v2178_v2 = vadd.f32 %v2177_v62, %v3350_v19  ;;  %v2179_v5 = vpop.f32.mrb[19].mxu1 }
0x23ca   :  { %v2180_v6 = vadd.f32 %v2179_v5, %v3356_v49 }
0x23cb   :  { %v2182_v15 = vmul.f32 0.5, %v2178_v2 }
0x23cc   :  { %2665 = vtanh.f32 %v2180_v6  ;;  %v2183_v49 = vmul.f32 0.5, %v2180_v6 }
0x23cd   :  { %2667 = vtanh.f32 %v2182_v15 }
0x23d6   :  { %v2666_v7 = vpop.eup %2665 }
0x23d7   :  { %2193 = vrot.lane.b32.xlu1 %v2666_v7, %s2748_s1  ;;  %v2668_v20 = vpop.eup %2667 }
0x23d8   :  { %v2186_v24 = vmul.f32 0.5, %v2668_v20 }
0x23da   :  { %v2188_v10 = vadd.f32 0.5, %v2186_v24 }
0x23dc   :  { %v2191_v26 = vmul.f32 %v2188_v10, %v2093_v38 }
0x2449   :  { %v2194_v11 = vpop.permute.xlu1 %2193 }
0x244a   :  { %v2196_v16 = vmul.f32 %v2194_v11, %v2188_v10 }
0x244c   :  { %2198 = vrot.lane.b32.xlu0 %v2196_v16, %s2748_s1 }
0x24be   :  { %v2199_v27 = vpop.permute.xlu0 %2198 }
0x24bf   :  { %v2201_v12 = vadd.f32 %v2199_v27, %v2191_v26 }
0x24c1   :  { %2669 = vtanh.f32 %v2201_v12 }
0x24c2   :  { %2671 = vtanh.f32 %v2183_v49 }
0x24cb   :  { %v2670_v19 = vpop.eup %2669 }
0x24cc   :  { %2204 = vrot.lane.b32.xlu1 %v2670_v19, %s2748_s1  ;;  %v2672_v51 = vpop.eup %2671 }
0x24cd   :  { %v2187_v63 = vmul.f32 0.5, %v2672_v51 }
0x24cf   :  { %v2189_v0 = vadd.f32 0.5, %v2187_v63 }
0x253e   :  { %v2205_v13 = vpop.permute.xlu1 %2204 }
0x253f   :  { %v2207_v9 = vmul.f32 %v2205_v13, %v2189_v0 }
0x2541   :  { %2270 = vst.msk [vmem:[%s3520_s12 + $0x38] sm:$0xff] %vm359_vm5, %v2207_v9 }
0x2542   :  { %2209 = vst.msk [vmem:[%s3520_s12] sm:$0xff] %vm362_vm6, %v2207_v9 }
0x2543   :  { %2214 = vsyncpa [#allocation5], 1 }
0x2544   :  { %2215 = vsyncpa [#allocation7], 1 }

</bundles_post_ra>
